<compile_context>
chip_gen: v7x
topology: tpu7x:2x2x1
jax: 0.10.0
libtpu: 0.0.40
codegen_flags: <defaults>
</compile_context>

<pallas_src>
import numpy as np
import jax
import jax.numpy as jnp
from jax.experimental import pallas as pl
from jax.experimental.pallas import tpu as pltpu


def get_frequency_modes(seq_len, modes=4, seed=0):
    """Deterministic re-implementation of the module's random mode selection."""
    modes = min(modes, seq_len // 2)
    index = list(range(seq_len // 2))
    np.random.RandomState(seed).shuffle(index)
    index = sorted(index[:modes])
    return index


# ----------------------------- Pallas kernel ------------------------------ #
def _fedformer_kernel(x_ref, wqt_ref, bq_ref, f2_ref, wcat_ref, c2_ref,
                      g_ref, b_ref, o_ref):
    TB, L, hid = x_ref.shape
    M = f2_ref.shape[1] // 2                 # number of selected frequency modes
    cdt = wqt_ref.dtype                      # MXU compute dtype (bf16 by default)
    f32 = jnp.float32
    # shared batched-matmul dims: contract lhs[-1] with rhs[1], batch on axis 0
    dn = (((2,), (1,)), ((0,), (0,)))

    x3 = x_ref[...]                          # (TB, L, hid) f32, kept for residual
    x2d = x3.reshape(TB * L, hid)            # leading-dim merge (free when L%8==0)

    # ---- token projection: one (TB*L, hid) @ (hid, hid) MXU matmul --------
    q2d = jnp.dot(x2d.astype(cdt), wqt_ref[...],
                  preferred_element_type=f32) + bq_ref[...]
    q3 = q2d.astype(cdt).reshape(TB, L, hid)

    # ---- forward rDFT at the selected bins, Re/Im rows fused, TB-batched --
    # (TB, 2M, L) @ (TB, L, hid) -> (TB, 2M, hid); rows [:M]=Re, [M:]=Im
    hf = jax.lax.dot_general(f2_ref[...], q3, dn, preferred_element_type=f32)

    # ---- per-mode complex channel mixing -----------------------------------
    # Head block-diagonal structure, real/imag blocks and the (h,o)->o*H+h
    # output-channel permutation are folded into wcat host-side, so this is a
    # single mode-batched matmul.  Frequency tensors are ~L/(2M)x smaller than
    # the slab, so the leading-axis transposes / concats here are cheap.
    hm = jnp.transpose(hf, (1, 0, 2))                        # (2M, TB, hid)
    hc = jnp.concatenate([hm[:M], hm[M:]], axis=-1)          # (M, TB, 2hid) [Re|Im]
    hc2 = jnp.concatenate([hc, hc], axis=0).astype(cdt)      # (2M, TB, 2hid)
    ocat = jax.lax.dot_general(hc2, wcat_ref[...], dn,
                               preferred_element_type=f32)   # (2M, TB, hid) [Or;Oi]

    # ---- inverse rDFT on bins 0..M-1, Re/Im columns fused, TB-batched -----
    ob = jnp.transpose(ocat, (1, 0, 2)).astype(cdt)          # (TB, 2M, hid)
    y3 = jax.lax.dot_general(c2_ref[...], ob, dn,
                             preferred_element_type=f32)     # (TB, L, hid)

    # TODO(synk): nn.Dropout is identity at inference; training-mode dropout
    # (hardware PRNG mask) is not implemented here.
    # ---- residual + LayerNorm in f32 (biased variance, eps=1e-5) ----------
    res = y3.reshape(TB * L, hid) + x2d
    mu = jnp.mean(res, axis=-1, keepdims=True)
    var = jnp.mean((res - mu) ** 2, axis=-1, keepdims=True)
    out = (res - mu) * jax.lax.rsqrt(var + 1e-5) * g_ref[...] + b_ref[...]
    o_ref[...] = out.reshape(TB, L, hid).astype(o_ref.dtype)


# ------------------------------- Wrapper ---------------------------------- #
def _vmem_budget_bytes():
    """~3/4 of this generation's physical VMEM (v5e/v6e 128 MiB -> ~96 MiB,
    v7x 64 MiB -> ~48 MiB); conservative 48 MiB fallback if the query fails."""
    try:
        cap = int(pltpu.get_tpu_info().vmem_capacity_bytes)
        if cap <= 0:
            raise ValueError(cap)
    except Exception:
        cap = 64 * 1024 * 1024
    return (3 * cap) // 4


def _choose_batch_tile(bs, L, hid, M, budget, cbytes):
    """Largest TB dividing bs whose working set fits the VMEM budget, capped at
    bs//2 so the batch grid axis keeps >= 2 steps (lets v7x shard the grid
    across its two TensorCores; on v5e/v6e one extra ~0.35us step is noise)."""
    weights = (hid * hid + 2 * M * 2 * hid * hid) * cbytes + 3 * hid * 4
    # per batch element: double-buffered f32 in+out blocks, ~6 live f32
    # slab-sized temporaries, pre-broadcast DFT matrices, small freq tensors.
    per_b = 10 * L * hid * 4 + 4 * M * L * cbytes + 16 * M * hid * 4
    cap = bs // 2 if bs > 1 else 1
    best = 1
    for tb in range(1, cap + 1):
        if bs % tb == 0 and weights + tb * per_b <= budget:
            best = tb
    return best


def fedformer_forward(x, Wq, bq, W1r, W1i, index, gamma, beta,
                      *, compute_dtype=jnp.bfloat16):
    x = jnp.asarray(x, jnp.float32)
    bs, L, hid = x.shape
    H, Dk, _, M = W1r.shape
    assert H * Dk == hid and len(index) == M

    cdt = jnp.dtype(compute_dtype)
    budget = _vmem_budget_bytes()
    TB = _choose_batch_tile(bs, L, hid, M, budget, cdt.itemsize)
    grid = (bs // TB,)

    # ---- host-side parameter plumbing (glue only, done once per call) -----
    WqT = jnp.asarray(Wq, jnp.float32).T.astype(cdt)            # q = x @ Wq^T
    bq2 = jnp.asarray(bq, jnp.float32).reshape(1, hid)
    g2 = jnp.asarray(gamma, jnp.float32).reshape(1, hid)
    b2 = jnp.asarray(beta, jnp.float32).reshape(1, hid)

    t = np.arange(L)
    idx = np.asarray(index)
    # forward rDFT rows at the selected bins, Re and Im stacked: (2M, L)
    theta = 2.0 * np.pi * np.outer(idx, t) / L
    F2 = np.concatenate([np.cos(theta), -np.sin(theta)], axis=0)
    # inverse rDFT restricted to bins 0..M-1 (bin 0 weight 1, others 2), /L,
    # Re and Im column blocks fused: (L, 2M).  modes <= L//2 keeps the Nyquist
    # bin out of 0..M-1, so the factor-2 coefficient is always correct.
    k = np.arange(M)
    phi = 2.0 * np.pi * np.outer(t, k) / L
    coef = np.where(k == 0, 1.0, 2.0)[None, :] / L
    C2 = np.concatenate([coef * np.cos(phi), -coef * np.sin(phi)], axis=1)
    # pre-broadcast over the batch tile so the in-kernel DFTs are plain
    # leading-batch dot_generals (tiny: 2 * TB * 2M * L elements total).
    F2b = jnp.asarray(np.broadcast_to(F2[None], (TB, 2 * M, L)), cdt)
    C2b = jnp.asarray(np.broadcast_to(C2[None], (TB, L, 2 * M)), cdt)

    # Per-(mode, Re/Im-output) real mixing matrices, densified over heads
    # (head blocks on the diagonal), with the torch permute(0,3,2,1) output
    # channel order (c = o*H + h) folded into the output columns -> a single
    # mode-batched MXU matmul and no in-kernel channel shuffle.
    # TODO(synk): for H*2*Dk > 256 a head-block-diagonal (M,H)-batched
    # dot_general would avoid the H x FLOP overhead of this densification.
    W1r_np = np.asarray(W1r, np.float32)                        # (H, Dk, Dk, M)
    W1i_np = np.asarray(W1i, np.float32)
    Wcat = np.zeros((2 * M, 2 * hid, hid), np.float32)
    for h in range(H):
        blk = slice(h * Dk, (h + 1) * Dk)                       # Re rows / head cols
        blk_im = slice(hid + h * Dk, hid + (h + 1) * Dk)        # Im rows
        wr = np.moveaxis(W1r_np[h], -1, 0)                      # (M, Dk, Dk) [m,i,o]
        wi = np.moveaxis(W1i_np[h], -1, 0)
        Wcat[:M, blk, blk] = wr                                 # Re_out = Re Wr - Im Wi
        Wcat[:M, blk_im, blk] = -wi
        Wcat[M:, blk, blk] = wi                                 # Im_out = Re Wi + Im Wr
        Wcat[M:, blk_im, blk] = wr
    src = (np.arange(hid) % H) * Dk + (np.arange(hid) // H)     # natural <- head-major
    WcatJ = jnp.asarray(Wcat[:, :, src], cdt)

    def run(single_buffer_weights):
        wkw = (dict(pipeline_mode=pl.Buffered(1))
               if single_buffer_weights else {})
        c2map = lambda b: (0, 0)
        c3map = lambda b: (0, 0, 0)
        in_specs = [
            pl.BlockSpec((TB, L, hid), lambda b: (b, 0, 0)),            # x
            pl.BlockSpec((hid, hid), c2map, **wkw),                     # Wq^T
            pl.BlockSpec((1, hid), c2map, **wkw),                       # bq
            pl.BlockSpec((TB, 2 * M, L), c3map, **wkw),                 # fwd DFT
            pl.BlockSpec((2 * M, 2 * hid, hid), c3map, **wkw),          # mixing
            pl.BlockSpec((TB, L, 2 * M), c3map, **wkw),                 # inv DFT
            pl.BlockSpec((1, hid), c2map, **wkw),                       # gamma
            pl.BlockSpec((1, hid), c2map, **wkw),                       # beta
        ]
        out = pl.pallas_call(
            _fedformer_kernel,
            out_shape=jax.ShapeDtypeStruct((bs, L, hid), jnp.float32),
            grid=grid,
            in_specs=in_specs,
            out_specs=pl.BlockSpec((TB, L, hid), lambda b: (b, 0, 0)),
            compiler_params=pltpu.CompilerParams(
                dimension_semantics=("parallel",),
                vmem_limit_bytes=budget),
        )(x, WqT, bq2, F2b, WcatJ, C2b, g2, b2)
        return jax.block_until_ready(out)

    try:
        # Grid-invariant weight blocks single-buffered (halves their VMEM).
        return run(True)
    except Exception:
        # Fallback for Pallas versions without pipeline_mode / Buffered(1).
        return run(False)


# -------------------- float64 NumPy reference (for checking) --------------- #
def reference_forward_np(x, Wq, bq, W1r, W1i, index, gamma, beta):
    """Mirrors the PyTorch module exactly (real FFT), in float64."""
    x = np.asarray(x, np.float64)
    Wq = np.asarray(Wq, np.float64)
    bq = np.asarray(bq, np.float64)
    W1 = np.asarray(W1r, np.float64) + 1j * np.asarray(W1i, np.float64)
    gamma = np.asarray(gamma, np.float64)
    beta = np.asarray(beta, np.float64)
    bs, L, hid = x.shape
    H, Dk, _, M = W1.shape
    q = x @ Wq.T + bq
    q = q.reshape(bs, L, H, Dk).transpose(0, 2, 3, 1)            # (bs, H, Dk, L)
    x_ft = np.fft.rfft(q, axis=-1)
    out_ft = np.zeros((bs, H, Dk, L // 2 + 1), np.complex128)
    for wi, i in enumerate(index):
        out_ft[:, :, :, wi] = np.einsum('bhi,hio->bho',
                                        x_ft[:, :, :, i], W1[:, :, :, wi])
    x_if = np.fft.irfft(out_ft, n=L, axis=-1)
    out = x_if.transpose(0, 3, 2, 1).reshape(bs, L, hid)
    res = out + x
    mu = res.mean(-1, keepdims=True)
    var = ((res - mu) ** 2).mean(-1, keepdims=True)
    return (res - mu) / np.sqrt(var + 1e-5) * gamma + beta


# --------------------------------- main ------------------------------------ #
if __name__ == "__main__":
    bs, seq_len, hidden, n_head = 2, 8, 32, 4
    d_k = hidden // n_head

    key = jax.random.PRNGKey(0)
    k1, k2, k3, k4, kx = jax.random.split(key, 5)

    # Deterministic parameter init (shapes from FedformerLayer.__init__)
    Wq = (jax.random.normal(k1, (hidden, hidden), jnp.float32)
          * np.sqrt(2.0 / (hidden + d_k)))
    bq = jax.random.uniform(k2, (hidden,), jnp.float32,
                            -1.0 / np.sqrt(hidden), 1.0 / np.sqrt(hidden))
    index = get_frequency_modes(seq_len, modes=4, seed=0)
    modes = len(index)
    scale = 1.0 / (hidden * hidden)
    W1r = scale * jax.random.uniform(k3, (n_head, d_k, d_k, modes), jnp.float32)
    W1i = scale * jax.random.uniform(k4, (n_head, d_k, d_k, modes), jnp.float32)
    gamma = jnp.ones((hidden,), jnp.float32)
    beta = jnp.zeros((hidden,), jnp.float32)

    x = jax.random.normal(kx, (bs, seq_len, hidden), jnp.float32)

    out = fedformer_forward(x, Wq, bq, W1r, W1i, index, gamma, beta)
    out = jax.block_until_ready(out)

    ref = reference_forward_np(x, Wq, bq, W1r, W1i, index, gamma, beta)
    # MXU operands are bf16 (single-pass native matmuls); the residual path and
    # LayerNorm stay f32, so the tolerance below is generous for bf16 while
    # still catching any structural / permutation / sign error (those are O(1)).
    np.testing.assert_allclose(np.asarray(out), ref, rtol=2e-2, atol=2e-2)
    assert out.shape == (bs, seq_len, hidden)
    assert bool(jnp.all(jnp.isfinite(out)))
    print("KERNEL_OK")
</pallas_src>

<mosaic_0001>
module attributes {stable_mosaic.version = 11 : i64} {
  func.func @_fedformer_kernel(%arg0: i32, %arg1: memref<1x8x32xf32, #tpu.memory_space<vmem>>, %arg2: memref<32x32xbf16, #tpu.memory_space<vmem>>, %arg3: memref<1x32xf32, #tpu.memory_space<vmem>>, %arg4: memref<1x8x8xbf16, #tpu.memory_space<vmem>>, %arg5: memref<8x64x32xbf16, #tpu.memory_space<vmem>>, %arg6: memref<1x8x8xbf16, #tpu.memory_space<vmem>>, %arg7: memref<1x32xf32, #tpu.memory_space<vmem>>, %arg8: memref<1x32xf32, #tpu.memory_space<vmem>>, %arg9: memref<1x8x32xf32, #tpu.memory_space<vmem>>) attributes {dimension_semantics = [#tpu.dimension_semantics<parallel>], iteration_bounds = array<i64: 2>, scalar_prefetch = 0 : i64, scratch_operands = 0 : i64, tpu.core_type = #tpu.core_type<tc>, window_params = [{transform_indices = @transform_0, window_bounds = array<i64: 1, 8, 32>}, {pipeline_mode = #tpu.pipeline_mode<synchronous>, transform_indices = @transform_1, window_bounds = array<i64: 32, 32>}, {pipeline_mode = #tpu.pipeline_mode<synchronous>, transform_indices = @transform_2, window_bounds = array<i64: 1, 32>}, {pipeline_mode = #tpu.pipeline_mode<synchronous>, transform_indices = @transform_3, window_bounds = array<i64: 1, 8, 8>}, {pipeline_mode = #tpu.pipeline_mode<synchronous>, transform_indices = @transform_4, window_bounds = array<i64: 8, 64, 32>}, {pipeline_mode = #tpu.pipeline_mode<synchronous>, transform_indices = @transform_5, window_bounds = array<i64: 1, 8, 8>}, {pipeline_mode = #tpu.pipeline_mode<synchronous>, transform_indices = @transform_6, window_bounds = array<i64: 1, 32>}, {pipeline_mode = #tpu.pipeline_mode<synchronous>, transform_indices = @transform_7, window_bounds = array<i64: 1, 32>}, {transform_indices = @transform_8, window_bounds = array<i64: 1, 8, 32>}]} {
    %c0 = arith.constant 0 : index
    %c0_0 = arith.constant 0 : index
    %c0_1 = arith.constant 0 : index
    %0 = vector.load %arg1[%c0, %c0_0, %c0_1] : memref<1x8x32xf32, #tpu.memory_space<vmem>>, vector<1x8x32xf32>
    %1 = vector.shape_cast %0 : vector<1x8x32xf32> to vector<8x32xf32>
    %2 = arith.truncf %1 : vector<8x32xf32> to vector<8x32xbf16>
    %c0_2 = arith.constant 0 : index
    %c0_3 = arith.constant 0 : index
    %3 = vector.load %arg2[%c0_2, %c0_3] : memref<32x32xbf16, #tpu.memory_space<vmem>>, vector<32x32xbf16>
    %cst = arith.constant dense<0.000000e+00> : vector<8x32xf32>
    %4 = tpu.matmul %2, %3, %cst {dimension_numbers = #tpu.dot_dimension_numbers<[1], [0], [0], [1], [0, 0, 1, 1], [], []>} : vector<8x32xbf16>, vector<32x32xbf16>, vector<8x32xf32> -> vector<8x32xf32>
    %c0_4 = arith.constant 0 : index
    %c0_5 = arith.constant 0 : index
    %5 = vector.load %arg3[%c0_4, %c0_5] : memref<1x32xf32, #tpu.memory_space<vmem>>, vector<1x32xf32>
    %6 = vector.broadcast %5 : vector<1x32xf32> to vector<8x32xf32>
    %7 = arith.addf %4, %6 : vector<8x32xf32>
    %8 = arith.truncf %7 : vector<8x32xf32> to vector<8x32xbf16>
    %9 = vector.shape_cast %8 : vector<8x32xbf16> to vector<1x8x32xbf16>
    %c0_6 = arith.constant 0 : index
    %c0_7 = arith.constant 0 : index
    %c0_8 = arith.constant 0 : index
    %10 = vector.load %arg4[%c0_6, %c0_7, %c0_8] : memref<1x8x8xbf16, #tpu.memory_space<vmem>>, vector<1x8x8xbf16>
    %cst_9 = arith.constant dense<0.000000e+00> : vector<1x8x32xf32>
    %11 = tpu.matmul %10, %9, %cst_9 {dimension_numbers = #tpu.dot_dimension_numbers<[2], [1], [1], [2], [0, 0, 0, 1, 1, 2], [0], [0]>} : vector<1x8x8xbf16>, vector<1x8x32xbf16>, vector<1x8x32xf32> -> vector<1x8x32xf32>
    %12 = tpu.transpose %11, [1, 0, 2] : vector<1x8x32xf32> -> vector<8x1x32xf32>
    %13 = vector.extract_strided_slice %12 {offsets = [0, 0, 0], sizes = [4, 1, 32], strides = [1, 1, 1]} : vector<8x1x32xf32> to vector<4x1x32xf32>
    %14 = vector.extract_strided_slice %12 {offsets = [4, 0, 0], sizes = [4, 1, 32], strides = [1, 1, 1]} : vector<8x1x32xf32> to vector<4x1x32xf32>
    %15 = tpu.concatenate %13, %14 in 2 : vector<4x1x32xf32>, vector<4x1x32xf32> -> vector<4x1x64xf32>
    %16 = tpu.concatenate %15, %15 in 0 : vector<4x1x64xf32>, vector<4x1x64xf32> -> vector<8x1x64xf32>
    %17 = arith.truncf %16 : vector<8x1x64xf32> to vector<8x1x64xbf16>
    %c0_10 = arith.constant 0 : index
    %c0_11 = arith.constant 0 : index
    %c0_12 = arith.constant 0 : index
    %18 = vector.load %arg5[%c0_10, %c0_11, %c0_12] : memref<8x64x32xbf16, #tpu.memory_space<vmem>>, vector<8x64x32xbf16>
    %cst_13 = arith.constant dense<0.000000e+00> : vector<8x1x32xf32>
    %19 = tpu.matmul %17, %18, %cst_13 {dimension_numbers = #tpu.dot_dimension_numbers<[2], [1], [1], [2], [0, 0, 0, 1, 1, 2], [0], [0]>} : vector<8x1x64xbf16>, vector<8x64x32xbf16>, vector<8x1x32xf32> -> vector<8x1x32xf32>
    %20 = tpu.transpose %19, [1, 0, 2] : vector<8x1x32xf32> -> vector<1x8x32xf32>
    %21 = arith.truncf %20 : vector<1x8x32xf32> to vector<1x8x32xbf16>
    %c0_14 = arith.constant 0 : index
    %c0_15 = arith.constant 0 : index
    %c0_16 = arith.constant 0 : index
    %22 = vector.load %arg6[%c0_14, %c0_15, %c0_16] : memref<1x8x8xbf16, #tpu.memory_space<vmem>>, vector<1x8x8xbf16>
    %cst_17 = arith.constant dense<0.000000e+00> : vector<1x8x32xf32>
    %23 = tpu.matmul %22, %21, %cst_17 {dimension_numbers = #tpu.dot_dimension_numbers<[2], [1], [1], [2], [0, 0, 0, 1, 1, 2], [0], [0]>} : vector<1x8x8xbf16>, vector<1x8x32xbf16>, vector<1x8x32xf32> -> vector<1x8x32xf32>
    %24 = vector.shape_cast %23 : vector<1x8x32xf32> to vector<8x32xf32>
    %25 = arith.addf %24, %1 : vector<8x32xf32>
    %cst_18 = arith.constant dense<0.000000e+00> : vector<8xf32>
    %26 = vector.multi_reduction <add>, %25, %cst_18 [1] : vector<8x32xf32> to vector<8xf32>
    %27 = vector.shape_cast %26 : vector<8xf32> to vector<8x1xf32>
    %cst_19 = arith.constant 3.200000e+01 : f32
    %28 = vector.broadcast %cst_19 : f32 to vector<8x1xf32>
    %29 = arith.divf %27, %28 : vector<8x1xf32>
    %30 = vector.broadcast %29 : vector<8x1xf32> to vector<8x32xf32>
    %31 = arith.subf %25, %30 : vector<8x32xf32>
    %32 = arith.mulf %31, %31 : vector<8x32xf32>
    %cst_20 = arith.constant dense<0.000000e+00> : vector<8xf32>
    %33 = vector.multi_reduction <add>, %32, %cst_20 [1] : vector<8x32xf32> to vector<8xf32>
    %34 = vector.shape_cast %33 : vector<8xf32> to vector<8x1xf32>
    %cst_21 = arith.constant 3.200000e+01 : f32
    %35 = vector.broadcast %cst_21 : f32 to vector<8x1xf32>
    %36 = arith.divf %34, %35 : vector<8x1xf32>
    %37 = vector.broadcast %29 : vector<8x1xf32> to vector<8x32xf32>
    %38 = arith.subf %25, %37 : vector<8x32xf32>
    %cst_22 = arith.constant 9.99999974E-6 : f32
    %39 = vector.broadcast %cst_22 : f32 to vector<8x1xf32>
    %40 = arith.addf %36, %39 : vector<8x1xf32>
    %41 = math.rsqrt %40 : vector<8x1xf32>
    %42 = vector.broadcast %41 : vector<8x1xf32> to vector<8x32xf32>
    %43 = arith.mulf %38, %42 : vector<8x32xf32>
    %c0_23 = arith.constant 0 : index
    %c0_24 = arith.constant 0 : index
    %44 = vector.load %arg7[%c0_23, %c0_24] : memref<1x32xf32, #tpu.memory_space<vmem>>, vector<1x32xf32>
    %45 = vector.broadcast %44 : vector<1x32xf32> to vector<8x32xf32>
    %46 = arith.mulf %43, %45 : vector<8x32xf32>
    %c0_25 = arith.constant 0 : index
    %c0_26 = arith.constant 0 : index
    %47 = vector.load %arg8[%c0_25, %c0_26] : memref<1x32xf32, #tpu.memory_space<vmem>>, vector<1x32xf32>
    %48 = vector.broadcast %47 : vector<1x32xf32> to vector<8x32xf32>
    %49 = arith.addf %46, %48 : vector<8x32xf32>
    %50 = vector.shape_cast %49 : vector<8x32xf32> to vector<1x8x32xf32>
    %c0_27 = arith.constant 0 : index
    %c0_28 = arith.constant 0 : index
    %c0_29 = arith.constant 0 : index
    %51 = vector.load %arg9[%c0_27, %c0_28, %c0_29] : memref<1x8x32xf32, #tpu.memory_space<vmem>>, vector<1x8x32xf32>
    tpu.vector_store %arg9[%c0_27, %c0_28, %c0_29], %50 {strides = array<i32>} : memref<1x8x32xf32, #tpu.memory_space<vmem>>, vector<1x8x32xf32>,
    return
  }
  func.func @transform_0(%arg0: i32) -> (i32, i32, i32) {
    %c0_i32 = arith.constant 0 : i32
    %c0_i32_0 = arith.constant 0 : i32
    %c0_i32_1 = arith.constant 0 : i32
    return %arg0, %c0_i32, %c0_i32_0 : i32, i32, i32
  }
  func.func @transform_1(%arg0: i32) -> (i32, i32) {
    %c0_i32 = arith.constant 0 : i32
    %c0_i32_0 = arith.constant 0 : i32
    %c0_i32_1 = arith.constant 0 : i32
    return %c0_i32, %c0_i32_0 : i32, i32
  }
  func.func @transform_2(%arg0: i32) -> (i32, i32) {
    %c0_i32 = arith.constant 0 : i32
    %c0_i32_0 = arith.constant 0 : i32
    %c0_i32_1 = arith.constant 0 : i32
    return %c0_i32, %c0_i32_0 : i32, i32
  }
  func.func @transform_3(%arg0: i32) -> (i32, i32, i32) {
    %c0_i32 = arith.constant 0 : i32
    %c0_i32_0 = arith.constant 0 : i32
    %c0_i32_1 = arith.constant 0 : i32
    %c0_i32_2 = arith.constant 0 : i32
    return %c0_i32, %c0_i32_0, %c0_i32_1 : i32, i32, i32
  }
  func.func @transform_4(%arg0: i32) -> (i32, i32, i32) {
    %c0_i32 = arith.constant 0 : i32
    %c0_i32_0 = arith.constant 0 : i32
    %c0_i32_1 = arith.constant 0 : i32
    %c0_i32_2 = arith.constant 0 : i32
    return %c0_i32, %c0_i32_0, %c0_i32_1 : i32, i32, i32
  }
  func.func @transform_5(%arg0: i32) -> (i32, i32, i32) {
    %c0_i32 = arith.constant 0 : i32
    %c0_i32_0 = arith.constant 0 : i32
    %c0_i32_1 = arith.constant 0 : i32
    %c0_i32_2 = arith.constant 0 : i32
    return %c0_i32, %c0_i32_0, %c0_i32_1 : i32, i32, i32
  }
  func.func @transform_6(%arg0: i32) -> (i32, i32) {
    %c0_i32 = arith.constant 0 : i32
    %c0_i32_0 = arith.constant 0 : i32
    %c0_i32_1 = arith.constant 0 : i32
    return %c0_i32, %c0_i32_0 : i32, i32
  }
  func.func @transform_7(%arg0: i32) -> (i32, i32) {
    %c0_i32 = arith.constant 0 : i32
    %c0_i32_0 = arith.constant 0 : i32
    %c0_i32_1 = arith.constant 0 : i32
    return %c0_i32, %c0_i32_0 : i32, i32
  }
  func.func @transform_8(%arg0: i32) -> (i32, i32, i32) {
    %c0_i32 = arith.constant 0 : i32
    %c0_i32_0 = arith.constant 0 : i32
    %c0_i32_1 = arith.constant 0 : i32
    return %arg0, %c0_i32, %c0_i32_0 : i32, i32, i32
  }
}

module attributes {stable_mosaic.version = 11 : i64} {
  func.func @_fedformer_kernel(%arg0: i32, %arg1: memref<1x8x32xf32, #tpu.memory_space<vmem>>, %arg2: memref<32x32xbf16, #tpu.memory_space<vmem>>, %arg3: memref<1x32xf32, #tpu.memory_space<vmem>>, %arg4: memref<1x8x8xbf16, #tpu.memory_space<vmem>>, %arg5: memref<8x64x32xbf16, #tpu.memory_space<vmem>>, %arg6: memref<1x8x8xbf16, #tpu.memory_space<vmem>>, %arg7: memref<1x32xf32, #tpu.memory_space<vmem>>, %arg8: memref<1x32xf32, #tpu.memory_space<vmem>>, %arg9: memref<1x8x32xf32, #tpu.memory_space<vmem>>) attributes {dimension_semantics = [#tpu.dimension_semantics<parallel>], iteration_bounds = array<i64: 2>, scalar_prefetch = 0 : i64, scratch_operands = 0 : i64, tpu.core_type = #tpu.core_type<tc>, window_params = [{transform_indices = @transform_0, window_bounds = array<i64: 1, 8, 32>}, {pipeline_mode = #tpu.pipeline_mode<synchronous>, transform_indices = @transform_1, window_bounds = array<i64: 32, 32>}, {pipeline_mode = #tpu.pipeline_mode<synchronous>, transform_indices = @transform_2, window_bounds = array<i64: 1, 32>}, {pipeline_mode = #tpu.pipeline_mode<synchronous>, transform_indices = @transform_3, window_bounds = array<i64: 1, 8, 8>}, {pipeline_mode = #tpu.pipeline_mode<synchronous>, transform_indices = @transform_4, window_bounds = array<i64: 8, 64, 32>}, {pipeline_mode = #tpu.pipeline_mode<synchronous>, transform_indices = @transform_5, window_bounds = array<i64: 1, 8, 8>}, {pipeline_mode = #tpu.pipeline_mode<synchronous>, transform_indices = @transform_6, window_bounds = array<i64: 1, 32>}, {pipeline_mode = #tpu.pipeline_mode<synchronous>, transform_indices = @transform_7, window_bounds = array<i64: 1, 32>}, {transform_indices = @transform_8, window_bounds = array<i64: 1, 8, 32>}]} {
    %c0 = arith.constant 0 : index
    %c0_0 = arith.constant 0 : index
    %c0_1 = arith.constant 0 : index
    %0 = vector.load %arg1[%c0, %c0_0, %c0_1] : memref<1x8x32xf32, #tpu.memory_space<vmem>>, vector<1x8x32xf32>
    %1 = vector.shape_cast %0 : vector<1x8x32xf32> to vector<8x32xf32>
    %2 = arith.truncf %1 : vector<8x32xf32> to vector<8x32xbf16>
    %c0_2 = arith.constant 0 : index
    %c0_3 = arith.constant 0 : index
    %3 = vector.load %arg2[%c0_2, %c0_3] : memref<32x32xbf16, #tpu.memory_space<vmem>>, vector<32x32xbf16>
    %cst = arith.constant dense<0.000000e+00> : vector<8x32xf32>
    %4 = tpu.matmul %2, %3, %cst {dimension_numbers = #tpu.dot_dimension_numbers<[1], [0], [0], [1], [0, 0, 1, 1], [], []>} : vector<8x32xbf16>, vector<32x32xbf16>, vector<8x32xf32> -> vector<8x32xf32>
    %c0_4 = arith.constant 0 : index
    %c0_5 = arith.constant 0 : index
    %5 = vector.load %arg3[%c0_4, %c0_5] : memref<1x32xf32, #tpu.memory_space<vmem>>, vector<1x32xf32>
    %6 = vector.broadcast %5 : vector<1x32xf32> to vector<8x32xf32>
    %7 = arith.addf %4, %6 : vector<8x32xf32>
    %8 = arith.truncf %7 : vector<8x32xf32> to vector<8x32xbf16>
    %9 = vector.shape_cast %8 : vector<8x32xbf16> to vector<1x8x32xbf16>
    %c0_6 = arith.constant 0 : index
    %c0_7 = arith.constant 0 : index
    %c0_8 = arith.constant 0 : index
    %10 = vector.load %arg4[%c0_6, %c0_7, %c0_8] : memref<1x8x8xbf16, #tpu.memory_space<vmem>>, vector<1x8x8xbf16>
    %cst_9 = arith.constant dense<0.000000e+00> : vector<1x8x32xf32>
    %11 = tpu.matmul %10, %9, %cst_9 {dimension_numbers = #tpu.dot_dimension_numbers<[2], [1], [1], [2], [0, 0, 0, 1, 1, 2], [0], [0]>} : vector<1x8x8xbf16>, vector<1x8x32xbf16>, vector<1x8x32xf32> -> vector<1x8x32xf32>
    %12 = tpu.transpose %11, [1, 0, 2] : vector<1x8x32xf32> -> vector<8x1x32xf32>
    %13 = vector.extract_strided_slice %12 {offsets = [0, 0, 0], sizes = [4, 1, 32], strides = [1, 1, 1]} : vector<8x1x32xf32> to vector<4x1x32xf32>
    %14 = vector.extract_strided_slice %12 {offsets = [4, 0, 0], sizes = [4, 1, 32], strides = [1, 1, 1]} : vector<8x1x32xf32> to vector<4x1x32xf32>
    %15 = tpu.concatenate %13, %14 in 2 : vector<4x1x32xf32>, vector<4x1x32xf32> -> vector<4x1x64xf32>
    %16 = tpu.concatenate %15, %15 in 0 : vector<4x1x64xf32>, vector<4x1x64xf32> -> vector<8x1x64xf32>
    %17 = arith.truncf %16 : vector<8x1x64xf32> to vector<8x1x64xbf16>
    %c0_10 = arith.constant 0 : index
    %c0_11 = arith.constant 0 : index
    %c0_12 = arith.constant 0 : index
    %18 = vector.load %arg5[%c0_10, %c0_11, %c0_12] : memref<8x64x32xbf16, #tpu.memory_space<vmem>>, vector<8x64x32xbf16>
    %cst_13 = arith.constant dense<0.000000e+00> : vector<8x1x32xf32>
    %19 = tpu.matmul %17, %18, %cst_13 {dimension_numbers = #tpu.dot_dimension_numbers<[2], [1], [1], [2], [0, 0, 0, 1, 1, 2], [0], [0]>} : vector<8x1x64xbf16>, vector<8x64x32xbf16>, vector<8x1x32xf32> -> vector<8x1x32xf32>
    %20 = tpu.transpose %19, [1, 0, 2] : vector<8x1x32xf32> -> vector<1x8x32xf32>
    %21 = arith.truncf %20 : vector<1x8x32xf32> to vector<1x8x32xbf16>
    %c0_14 = arith.constant 0 : index
    %c0_15 = arith.constant 0 : index
    %c0_16 = arith.constant 0 : index
    %22 = vector.load %arg6[%c0_14, %c0_15, %c0_16] : memref<1x8x8xbf16, #tpu.memory_space<vmem>>, vector<1x8x8xbf16>
    %cst_17 = arith.constant dense<0.000000e+00> : vector<1x8x32xf32>
    %23 = tpu.matmul %22, %21, %cst_17 {dimension_numbers = #tpu.dot_dimension_numbers<[2], [1], [1], [2], [0, 0, 0, 1, 1, 2], [0], [0]>} : vector<1x8x8xbf16>, vector<1x8x32xbf16>, vector<1x8x32xf32> -> vector<1x8x32xf32>
    %24 = vector.shape_cast %23 : vector<1x8x32xf32> to vector<8x32xf32>
    %25 = arith.addf %24, %1 : vector<8x32xf32>
    %cst_18 = arith.constant dense<0.000000e+00> : vector<8xf32>
    %26 = vector.multi_reduction <add>, %25, %cst_18 [1] : vector<8x32xf32> to vector<8xf32>
    %27 = vector.shape_cast %26 : vector<8xf32> to vector<8x1xf32>
    %cst_19 = arith.constant 3.200000e+01 : f32
    %28 = vector.broadcast %cst_19 : f32 to vector<8x1xf32>
    %29 = arith.divf %27, %28 : vector<8x1xf32>
    %30 = vector.broadcast %29 : vector<8x1xf32> to vector<8x32xf32>
    %31 = arith.subf %25, %30 : vector<8x32xf32>
    %32 = arith.mulf %31, %31 : vector<8x32xf32>
    %cst_20 = arith.constant dense<0.000000e+00> : vector<8xf32>
    %33 = vector.multi_reduction <add>, %32, %cst_20 [1] : vector<8x32xf32> to vector<8xf32>
    %34 = vector.shape_cast %33 : vector<8xf32> to vector<8x1xf32>
    %cst_21 = arith.constant 3.200000e+01 : f32
    %35 = vector.broadcast %cst_21 : f32 to vector<8x1xf32>
    %36 = arith.divf %34, %35 : vector<8x1xf32>
    %37 = vector.broadcast %29 : vector<8x1xf32> to vector<8x32xf32>
    %38 = arith.subf %25, %37 : vector<8x32xf32>
    %cst_22 = arith.constant 9.99999974E-6 : f32
    %39 = vector.broadcast %cst_22 : f32 to vector<8x1xf32>
    %40 = arith.addf %36, %39 : vector<8x1xf32>
    %41 = math.rsqrt %40 : vector<8x1xf32>
    %42 = vector.broadcast %41 : vector<8x1xf32> to vector<8x32xf32>
    %43 = arith.mulf %38, %42 : vector<8x32xf32>
    %c0_23 = arith.constant 0 : index
    %c0_24 = arith.constant 0 : index
    %44 = vector.load %arg7[%c0_23, %c0_24] : memref<1x32xf32, #tpu.memory_space<vmem>>, vector<1x32xf32>
    %45 = vector.broadcast %44 : vector<1x32xf32> to vector<8x32xf32>
    %46 = arith.mulf %43, %45 : vector<8x32xf32>
    %c0_25 = arith.constant 0 : index
    %c0_26 = arith.constant 0 : index
    %47 = vector.load %arg8[%c0_25, %c0_26] : memref<1x32xf32, #tpu.memory_space<vmem>>, vector<1x32xf32>
    %48 = vector.broadcast %47 : vector<1x32xf32> to vector<8x32xf32>
    %49 = arith.addf %46, %48 : vector<8x32xf32>
    %50 = vector.shape_cast %49 : vector<8x32xf32> to vector<1x8x32xf32>
    %c0_27 = arith.constant 0 : index
    %c0_28 = arith.constant 0 : index
    %c0_29 = arith.constant 0 : index
    %51 = vector.load %arg9[%c0_27, %c0_28, %c0_29] : memref<1x8x32xf32, #tpu.memory_space<vmem>>, vector<1x8x32xf32>
    tpu.vector_store %arg9[%c0_27, %c0_28, %c0_29], %50 {strides = array<i32>} : memref<1x8x32xf32, #tpu.memory_space<vmem>>, vector<1x8x32xf32>,
    return
  }
  func.func @transform_0(%arg0: i32) -> (i32, i32, i32) {
    %c0_i32 = arith.constant 0 : i32
    %c0_i32_0 = arith.constant 0 : i32
    %c0_i32_1 = arith.constant 0 : i32
    return %arg0, %c0_i32, %c0_i32_0 : i32, i32, i32
  }
  func.func @transform_1(%arg0: i32) -> (i32, i32) {
    %c0_i32 = arith.constant 0 : i32
    %c0_i32_0 = arith.constant 0 : i32
    %c0_i32_1 = arith.constant 0 : i32
    return %c0_i32, %c0_i32_0 : i32, i32
  }
  func.func @transform_2(%arg0: i32) -> (i32, i32) {
    %c0_i32 = arith.constant 0 : i32
    %c0_i32_0 = arith.constant 0 : i32
    %c0_i32_1 = arith.constant 0 : i32
    return %c0_i32, %c0_i32_0 : i32, i32
  }
  func.func @transform_3(%arg0: i32) -> (i32, i32, i32) {
    %c0_i32 = arith.constant 0 : i32
    %c0_i32_0 = arith.constant 0 : i32
    %c0_i32_1 = arith.constant 0 : i32
    %c0_i32_2 = arith.constant 0 : i32
    return %c0_i32, %c0_i32_0, %c0_i32_1 : i32, i32, i32
  }
  func.func @transform_4(%arg0: i32) -> (i32, i32, i32) {
    %c0_i32 = arith.constant 0 : i32
    %c0_i32_0 = arith.constant 0 : i32
    %c0_i32_1 = arith.constant 0 : i32
    %c0_i32_2 = arith.constant 0 : i32
    return %c0_i32, %c0_i32_0, %c0_i32_1 : i32, i32, i32
  }
  func.func @transform_5(%arg0: i32) -> (i32, i32, i32) {
    %c0_i32 = arith.constant 0 : i32
    %c0_i32_0 = arith.constant 0 : i32
    %c0_i32_1 = arith.constant 0 : i32
    %c0_i32_2 = arith.constant 0 : i32
    return %c0_i32, %c0_i32_0, %c0_i32_1 : i32, i32, i32
  }
  func.func @transform_6(%arg0: i32) -> (i32, i32) {
    %c0_i32 = arith.constant 0 : i32
    %c0_i32_0 = arith.constant 0 : i32
    %c0_i32_1 = arith.constant 0 : i32
    return %c0_i32, %c0_i32_0 : i32, i32
  }
  func.func @transform_7(%arg0: i32) -> (i32, i32) {
    %c0_i32 = arith.constant 0 : i32
    %c0_i32_0 = arith.constant 0 : i32
    %c0_i32_1 = arith.constant 0 : i32
    return %c0_i32, %c0_i32_0 : i32, i32
  }
  func.func @transform_8(%arg0: i32) -> (i32, i32, i32) {
    %c0_i32 = arith.constant 0 : i32
    %c0_i32_0 = arith.constant 0 : i32
    %c0_i32_1 = arith.constant 0 : i32
    return %arg0, %c0_i32, %c0_i32_0 : i32, i32, i32
  }
}

</mosaic_0001>

<bundles_post_ra>
// kernel: tpu_custom_call.1
= control target key start
LH: loop header
LB: loop body
LE: loop exit
PB: predicated region body
PF: predicated region fallthrough
CT: control target
= control target key end

     0   :  { %13 = vsyncpa [#allocation3], 0  ;;  %s2041_s0 = inlined_call_operand.vmem [shape: f32[2,8,32], index: 0, kind: input, shape index: {}]   ;;  %s2042_s1 = inlined_call_operand.vmem [shape: bf16[32,32], index: 1, kind: input, shape index: {}]   ;;  %s2043_s2 = inlined_call_operand.vmem [shape: f32[1,32], index: 2, kind: input, shape index: {}]   ;;  %s2044_s3 = inlined_call_operand.vmem [shape: bf16[1,8,8], index: 3, kind: input, shape index: {}]   ;;  %s2045_s4 = inlined_call_operand.vmem [shape: bf16[8,64,32], index: 4, kind: input, shape index: {}]   ;;  %s2046_s5 = inlined_call_operand.vmem [shape: bf16[1,8,8], index: 5, kind: input, shape index: {}]   ;;  %s2047_s6 = inlined_call_operand.vmem [shape: f32[1,32], index: 6, kind: input, shape index: {}]   ;;  %s2048_s7 = inlined_call_operand.vmem [shape: f32[1,32], index: 7, kind: input, shape index: {}]   ;;  %s2049_s8 = inlined_call_operand.hbm [shape: f32[2,8,32], index: 8, kind: output, shape index: {}]  }
   0x1   :  { %15 = vsyncpa [#allocation3 + $0x1], 0  ;;  %s1710_s27 = smov 0   ;;  %s1712_s28 = smov 0  }
   0x2   :  { %s1714_s29 = smov 0   ;;  %s1716_s30 = smov 0  }
   0x3 LB: > { %s1731_s9 = sadd.s32 4294967295, %s1657_s30   ;;  %s1284_s10 = sadd.s32 4294967294, %s1657_s30   ;;  %s1657_s30 = sphi %s1716_s30, %s2055_s30   ;;  %s1653_s29 = sphi %s1714_s29, %s2054_s29   ;;  %s1649_s28 = sphi %s1712_s28, %s2053_s28   ;;  %s1645_s27 = sphi %s1710_s27, %s2052_s27  }
   0x4   : > { %s1735_s11 = sadd.s32 1, %s1657_s30   ;;  %s201_s12 = sadd.s32 1, %s1653_s29 }
   0x5   : > { %s198_s13 = ssub.s32 %s1657_s30, %s1735_s11  ;;  %p211_p0 = scmp.ne.s32.totalorder %s1653_s29, %s1649_s28 }
   0x6   : > { %p199_p1 = scmp.eq.s32.totalorder %s198_s13, 0  ;;  %p212_p2 = scmp.eq.s32.totalorder %s1731_s9, 1 }
   0x7   : > { %p217_p3 = scmp.ne.s32.totalorder %s1649_s28, %s1645_s27  ;;  %p218_p4 = scmp.eq.s32.totalorder %s1284_s10, 1 }
   0x8   : > { %s1746_s14 = scalar_select %p199_p1, %s1653_s29, %s201_s12  }
   0x9   : > { %p1748_p5 = por %p212_p2, %p211_p0  ;;  %p1752_p6 = por %p218_p4, %p217_p3 }
   0xa   : > { %p1287_p7 = scmp.ge.s32.totalorder %s1657_s30, 1  ;;  %p264_p8 = scmp.lt.s32.totalorder %s1657_s30, 3 }
   0xc   : > { %p265_p9 = pnand %p1287_p7, %p264_p8 }
   0xd   : > { %v1559_v0 = vld [vmem:[%s2042_s1] sm:$0xff] (!%p265_p9)   ;;  %v1659_v1 = vmov (!%p265_p9), 0.0   ;;  %v1560_v2 = vld [vmem:[%s2042_s1 + $0x8] sm:$0xff] (!%p265_p9)   ;;  %vm1660_vm0 = vmmov (!%p265_p9), 0   ;;  %p297_p10 = scmp.lt.s32.totalorder (!%p265_p9), %s1731_s9, 1  ;;  %vm327_vm1 = vcmask (!%p265_p9), 261120   ;;  %v425_v22 = vlaneseq (!%p265_p9) }
   0xe   : > { %268 = sbr.rel (%p265_p9) target bundleno = 1407 (0x57f), region = 52  ;;  %1389 = vmatprep.subr.bf16.mxu0 (!%p265_p9), %v1659_v1  ;;  %1397 = vmatprep.subr.bf16.mxu1 (!%p265_p9), %v1659_v1  ;;  %v1290_v5 = vld [vmem:[%s2043_s2] ss:$0 sm:$0xff] (!%p265_p9)  ;;  %vm377_vm2 = vcmask (!%p265_p9), 1043456   ;;  %vm373_vm3 = vcmask (!%p265_p9), 64512   ;;  %v1563_v16 = vld [vmem:[%s2045_s4 + $0x8] sm:$0xff] (!%p265_p9)  }
   0xf   : > { %1390 = vmatpush3.bf16.msra.mxu0 (!%p265_p9), %v1559_v0  ;;  %1393 = vmatprep.mubr.msk.bf16.mxu0 (!%p265_p9), %vm1660_vm0, %v1659_v1  ;;  %v372_v13 = vld [vmem:[%s2044_s3] sm:$0xf] (!%p265_p9)  ;;  %v1564_v17 = vld [vmem:[%s2045_s4 + $0x28] sm:$0xff] (!%p265_p9)   ;;  %v1565_v18 = vld [vmem:[%s2045_s4 + $0x10] sm:$0xff] (!%p265_p9)   ;;  %v1661_v20 = vmov (!%p265_p9), 1983009808  }
  0x10   : > { %1391 = vmatprep.subr.bf16.mxu0 (!%p265_p9), %v1659_v1  ;;  %1399 = vmatprep.mubr.msk.bf16.mxu1 (!%p265_p9), %vm1660_vm0, %v1659_v1  ;;  %v1561_v14 = vld [vmem:[%s2045_s4] sm:$0xff] (!%p265_p9)   ;;  %v1566_v19 = vld [vmem:[%s2045_s4 + $0x30] sm:$0xff] (!%p265_p9)   ;;  %v423_v21 = vunpack.c.l.s4 (!%p265_p9), %v1661_v20  ;;  %v1662_v23 = vmov (!%p265_p9), 1934713408   ;;  %v426_v26 = vshrl.u32 (!%p265_p9), %v425_v22, 7  ;;  %v1567_v27 = vld [vmem:[%s2045_s4 + $0x18] sm:$0xff] (!%p265_p9)  }
  0x11   : > { %v1562_v15 = vld [vmem:[%s2045_s4 + $0x20] sm:$0xff] (!%p265_p9)   ;;  %v438_v24 = vunpack.c.l.s4 (!%p265_p9), %v1662_v23  ;;  %v1568_v28 = vld [vmem:[%s2045_s4 + $0x38] sm:$0xff] (!%p265_p9)   ;;  %s1663_s20 = smov (!%p265_p9), 32   ;;  %vm582_vm4 = vcmask (!%p265_p9), 523264   ;;  %v1571_v58 = vld [vmem:[%s2045_s4 + $0x48] sm:$0xff] (!%p265_p9)   ;;  %s294_s19 = sand.u32 (!%p265_p9), 1, %s1649_s28  }
  0x12   : > { %v424_v25 = vunpack.c.0.s8 (!%p265_p9), %v423_v21  ;;  %v1569_v53 = vld [vmem:[%s2045_s4 + $0x40] sm:$0xff] (!%p265_p9)   ;;  %v1572_v59 = vld [vmem:[%s2045_s4 + $0x68] sm:$0xff] (!%p265_p9)   ;;  %v1573_v62 = vld [vmem:[%s2045_s4 + $0x50] sm:$0xff] (!%p265_p9)   ;;  %s1212_s18 = scalar_lea.sflag (!%p265_p9), [#allocation3], %s294_s19 }
  0x13   : > { %1392 = vmatpush3.bf16.msra.mxu0 (!%p265_p9), %v1560_v2  ;;  %v439_v29 = vunpack.c.0.s8 (!%p265_p9), %v438_v24  ;;  %v1570_v54 = vld [vmem:[%s2045_s4 + $0x60] sm:$0xff] (!%p265_p9)   ;;  %v1574_v63 = vld [vmem:[%s2045_s4 + $0x70] sm:$0xff] (!%p265_p9)   ;;  %v1587_v21 = vld [vmem:[%s2045_s4 + $0xc8] sm:$0xff] (!%p265_p9)  }
  0x14   : > { %1415 = vmatprep.subr.bf16.mxu0 (!%p265_p9), %v1659_v1  ;;  %v1828_v32 = vsub.s32 (!%p265_p9), %v424_v25, %v426_v26  ;;  %v1586_v20 = vld [vmem:[%s2045_s4 + $0xe0] sm:$0xff] (!%p265_p9)   ;;  %v1588_v22 = vld [vmem:[%s2045_s4 + $0xe8] sm:$0xff] (!%p265_p9)   ;;  %v1589_v23 = vld [vmem:[%s2045_s4 + $0xd0] sm:$0xff] (!%p265_p9)  }
  0x15   : > { %s298_s21 = scalar_select %p297_p10, %s1731_s9, 1  ;;  %v1831_v36 = vsub.s32 %v439_v29, %v426_v26  ;;  %v1590_v24 = vld [vmem:[%s2045_s4 + $0xf0] sm:$0xff]   ;;  %v1591_v25 = vld [vmem:[%s2045_s4 + $0xd8] sm:$0xff]  }
  0x16   : > { %v1592_v26 = vld [vmem:[%s2045_s4 + $0xf8] sm:$0xff]  }
  0x17   : > { %s1289_s22 = sshll.u32 %s298_s21, 3 }
  0x18   : > { %s300_s25 = scalar_lea.vmem %s2041_s0, %s1289_s22 }
  0x19   : > { %v1777_v3 = vld [vmem:[%s300_s25] sm:$0xff]  ;;  %s1339_s25 = sshll.u32 %s1731_s9, 7  ;;  %s1664_s9 = smov [#allocation2]  }
  0x1a   : > { %v303_v4 = vpack.c.bf16 %v1777_v3, %v1777_v3  ;;  %s1998_s17 = scalar_lea.hbm %s2049_s8, %s1339_s25 }
  0x1c   : > { %1394 = vmatmul.mubr.msk.bf16.vlgmr.msra.gmra.mrb[0].mxu0 %vm327_vm1, %v303_v4 }
  0x1d   : > { %1423 = vmatprep.mubr.msk.bf16.mxu0 %vm1660_vm0, %v1659_v1  ;;  %1416 = vmatpush3.bf16.msra.mxu0 %v1562_v15  ;;  %v1581_v15 = vld [vmem:[%s2045_s4 + $0x90] sm:$0xff]  }
  0x1e   : > { %1417 = vmatprep.subr.bf16.mxu0 %v1659_v1 }
  0x21   : > { %1418 = vmatpush3.bf16.msra.mxu0 %v1564_v17  ;;  %v1583_v17 = vld [vmem:[%s2045_s4 + $0x98] sm:$0xff]  }
  0x22   : > { %1419 = vmatprep.subr.bf16.mxu0 %v1659_v1 }
  0x25   : > { %1420 = vmatpush3.bf16.msra.mxu0 %v1566_v19  ;;  %v1585_v19 = vld [vmem:[%s2045_s4 + $0xc0] sm:$0xff]  }
  0x26   : > { %1421 = vmatprep.subr.bf16.mxu0 %v1659_v1 }
  0x29   : > { %1422 = vmatpush3.bf16.msra.mxu0 %v1568_v28 }
  0x2a   : > { %1439 = vmatprep.subr.bf16.mxu0 %v1659_v1 }
  0xef   : > { %v365_v6 = vpop.f32.mrb[0].mxu0 }
  0xf0   : > { %v366_v7 = vadd.f32 %v1290_v5, %v365_v6  ;;  %v1395_v8 = vpop.f32.mrb[1].mxu0  ;;  %v1575_v5 = vld [vmem:[%s2045_s4 + $0x58] sm:$0xff]  }
  0xf1   : > { %v368_v9 = vpop.f32.mrb[2].mxu0  ;;  %v1576_v6 = vld [vmem:[%s2045_s4 + $0x78] sm:$0xff]  }
  0xf2   : > { %v371_v10 = vpack.c.bf16 %v366_v7, %v366_v7  ;;  %v1396_v11 = vpop.f32.mrb[3].mxu0  ;;  %v1577_v9 = vld [vmem:[%s2045_s4 + $0x80] sm:$0xff]  }
  0xf4   : > { %v379_v12 = vsel %vm377_vm2, %v371_v10, 0  ;;  %v1578_v10 = vld [vmem:[%s2045_s4 + $0xa0] sm:$0xff]  }
  0xf5   : > { %1398 = vmatpush3.bf16.msra.mxu1 %v379_v12 }
  0xf6   : > { %1403 = vmatprep.subr.bf16.mxu1 %v1659_v1 }
  0xf8   : > { %1400 = vmatmul.mubr.msk.bf16.vlgmr.msra.gmra.mrb[0].mxu1 %vm373_vm3, %v372_v13  ;;  %v1579_v13 = vld [vmem:[%s2045_s4 + $0x88] sm:$0xff]  }
  0xf9   : > { %1411 = vmatprep.mubr.msk.bf16.mxu1 %vm1660_vm0, %v1659_v1  ;;  %1404 = vmatpush3.bf16.msra.mxu1 %v1561_v14  ;;  %v1580_v14 = vld [vmem:[%s2045_s4 + $0xa8] sm:$0xff]  }
  0xfa   : > { %1405 = vmatprep.subr.bf16.mxu1 %v1659_v1 }
  0xfd   : > { %1406 = vmatpush3.bf16.msra.mxu1 %v1563_v16  ;;  %v1582_v16 = vld [vmem:[%s2045_s4 + $0xb0] sm:$0xff]  }
  0xfe   : > { %1407 = vmatprep.subr.bf16.mxu1 %v1659_v1 }
 0x101   : > { %1408 = vmatpush3.bf16.msra.mxu1 %v1565_v18  ;;  %v1584_v18 = vld [vmem:[%s2045_s4 + $0xb8] sm:$0xff]  }
 0x102   : > { %1409 = vmatprep.subr.bf16.mxu1 %v1659_v1 }
 0x105   : > { %1410 = vmatpush3.bf16.msra.mxu1 %v1567_v27 }
 0x106   : > { %1427 = vmatprep.subr.bf16.mxu1 %v1659_v1 }
 0x1cb   : > { %v415_v30 = vpop.f32.mrb[0].mxu1 }
 0x1cc   : > { %v421_v31 = vcombine.high %v415_v30, %v1659_v1  ;;  %v1401_v33 = vpop.f32.mrb[1].mxu1  ;;  %v428_v45 = vrot.slane %v415_v30, %v1828_v32 }
 0x1cd   : > { %v418_v34 = vpop.f32.mrb[2].mxu1 }
 0x1ce   : > { %v435_v35 = vrot.slane %v421_v31, %v1828_v32  ;;  %v1402_v37 = vpop.f32.mrb[3].mxu1  ;;  %v443_v46 = vrot.slane %v428_v45, %v1831_v36  ;;  %v436_v57 = vcombine.high %v428_v45, %v1659_v1 }
 0x1d0   : > { %v451_v38 = vcombine.high %v435_v35, %v1659_v1  ;;  %v458_v39 = vrot.slane %v435_v35, %v1831_v36  ;;  %v466_v48 = vcombine.high %v443_v46, %v1659_v1  ;;  %v450_v61 = vrot.slane %v436_v57, %v1831_v36 }
 0x1d2   : > { %v468_v40 = vcombine.high %v458_v39, %v1659_v1  ;;  %v465_v41 = vrot.slane %v451_v38, %v1831_v36  ;;  %v467_v4 = vcombine.high %v450_v61, %v1659_v1 }
 0x1d4   : > { %v1549_v42 = vpack.i.bf16 %v468_v40, %v458_v39  ;;  %v469_v43 = vcombine.high %v465_v41, %v1659_v1 }
 0x1d6   : > { %1550 = vrot.lane.b32.xlu0 %v1549_v42, %s1663_s20  ;;  %v1554_v44 = vpack.i.bf16 %v469_v43, %v465_v41 }
 0x1da   : > { %1555 = vrot.lane.b32.xlu0 %v1554_v44, %s1663_s20  ;;  %s1288_s20 = sshll.u32 %s294_s19, 3 }
 0x1db   : > { %s296_s26 = scalar_lea.vmem [#allocation2], %s1288_s20  ;;  %s1599_s20 = sshll.u32 %s1664_s9, 4  ;;  %s1600_s20 = int_to_ptr.vmem [resolvable:$false] %s1599_s20 }
 0x1dc   : > { %s1225_s10 = sshll.u32 %s296_s26, 4  ;;  %s1601_s22 = scalar_lea.vmem %s1600_s20, 256  ;;  %s2000_s10 = int_to_ptr.vmem [resolvable:$true] %s1225_s10 }
 0x1dd   : > { %s1595_s21 = scalar_lea.vmem %s2000_s10, 128  ;;  %p1602_p0 = scmp.lt.s32.totalorder %s2000_s10, %s1600_s20 }
 0x1de   : > { %p1596_p11 = scmp.ne.s32.totalorder %s2000_s10, %s1595_s21  ;;  %p1603_p1 = scmp.lt.s32.totalorder %s1601_s22, %s1595_s21 }
 0x1e0   : > { %p1597_p12 = pnand %p1596_p11, %p1748_p5  ;;  %p1604_p2 = por %p1603_p1, %p1602_p0 }
 0x1e2   : > { %p1598_p13 = pneg %p1597_p12 }
 0x1e4   : > { %p1605_p3 = pnand %p1604_p2, %p1598_p13 }
 0x248   : > { %v1551_v47 = vpop.permute.xlu0 %1550 }
 0x249   : > { %v1553_v49 = vunpack.i.h.bf16 %v1551_v47  ;;  %v1552_v50 = vunpack.i.l.bf16 %v1551_v47 }
 0x24b   : > { %v487_v51 = vsel %vm327_vm1, %v466_v48, %v1553_v49  ;;  %v486_v52 = vsel %vm327_vm1, %v443_v46, %v1552_v50 }
 0x24c   : > { %v1849_v55 = vpack.c.bf16 %v487_v51, %v487_v51  ;;  %v1851_v56 = vpack.c.bf16 %v486_v52, %v486_v52  ;;  %v1556_v60 = vpop.permute.xlu0 %1555 }
 0x24d   : > { %v1558_v0 = vunpack.i.h.bf16 %v1556_v60  ;;  %v1557_v2 = vunpack.i.l.bf16 %v1556_v60 }
 0x24e   : > { %1412 = vmatmul.mubr.msk.bf16.vlgmr.msra.gmra.mrb[4].mxu1 %vm582_vm4, %v1851_v56  ;;  %1424 = vmatmul.mubr.msk.bf16.vlgmr.msra.gmra.mrb[4].mxu0 %vm582_vm4, %v1849_v55 }
 0x24f   : > { %1428 = vmatpush3.bf16.msra.mxu1 %v1569_v53  ;;  %1440 = vmatpush3.bf16.msra.mxu0 %v1570_v54  ;;  %v489_v7 = vsel %vm327_vm1, %v467_v4, %v1558_v0  ;;  %v488_v8 = vsel %vm327_vm1, %v450_v61, %v1557_v2 }
 0x250   : > { %1429 = vmatprep.subr.bf16.mxu1 %v1659_v1  ;;  %1441 = vmatprep.subr.bf16.mxu0 %v1659_v1  ;;  %v493_v11 = vpack.c.bf16 %v489_v7, %v489_v7  ;;  %v492_v12 = vpack.c.bf16 %v488_v8, %v488_v8 }
 0x251   : > { %1435 = vmatprep.mubr.msk.bf16.mxu1 %vm1660_vm0, %v1659_v1  ;;  %1447 = vmatprep.mubr.msk.bf16.mxu0 %vm1660_vm0, %v1659_v1 }
 0x253   : > { %1430 = vmatpush3.bf16.msra.mxu1 %v1571_v58  ;;  %1442 = vmatpush3.bf16.msra.mxu0 %v1572_v59 }
 0x254   : > { %1431 = vmatprep.subr.bf16.mxu1 %v1659_v1  ;;  %1443 = vmatprep.subr.bf16.mxu0 %v1659_v1 }
 0x257   : > { %1432 = vmatpush3.bf16.msra.mxu1 %v1573_v62  ;;  %1444 = vmatpush3.bf16.msra.mxu0 %v1574_v63 }
 0x258   : > { %1433 = vmatprep.subr.bf16.mxu1 %v1659_v1  ;;  %1445 = vmatprep.subr.bf16.mxu0 %v1659_v1 }
 0x25b   : > { %1434 = vmatpush3.bf16.msra.mxu1 %v1575_v5  ;;  %1446 = vmatpush3.bf16.msra.mxu0 %v1576_v6 }
 0x25c   : > { %1451 = vmatprep.subr.bf16.mxu1 %v1659_v1  ;;  %1463 = vmatprep.subr.bf16.mxu0 %v1659_v1 }
 0x25e   : > { %1436 = vmatmul.mubr.msk.bf16.vlgmr.msra.gmra.mrb[8].mxu1 %vm582_vm4, %v492_v12  ;;  %1448 = vmatmul.mubr.msk.bf16.vlgmr.msra.gmra.mrb[8].mxu0 %vm582_vm4, %v493_v11 }
 0x25f   : > { %1452 = vmatpush3.bf16.msra.mxu1 %v1577_v9  ;;  %1464 = vmatpush3.bf16.msra.mxu0 %v1578_v10 }
 0x260   : > { %1453 = vmatprep.subr.bf16.mxu1 %v1659_v1  ;;  %1465 = vmatprep.subr.bf16.mxu0 %v1659_v1 }
 0x261   : > { %1459 = vmatprep.mubr.msk.bf16.mxu1 %vm1660_vm0, %v1659_v1  ;;  %1471 = vmatprep.mubr.msk.bf16.mxu0 %vm1660_vm0, %v1659_v1 }
 0x263   : > { %1454 = vmatpush3.bf16.msra.mxu1 %v1579_v13  ;;  %1466 = vmatpush3.bf16.msra.mxu0 %v1580_v14  ;;  %v1133_v13 = vld [vmem:[%s2046_s5] sm:$0xf] }
 0x264   : > { %1455 = vmatprep.subr.bf16.mxu1 %v1659_v1  ;;  %1467 = vmatprep.subr.bf16.mxu0 %v1659_v1 }
 0x267   : > { %1456 = vmatpush3.bf16.msra.mxu1 %v1581_v15  ;;  %1468 = vmatpush3.bf16.msra.mxu0 %v1582_v16 }
 0x268   : > { %1457 = vmatprep.subr.bf16.mxu1 %v1659_v1  ;;  %1469 = vmatprep.subr.bf16.mxu0 %v1659_v1 }
 0x26b   : > { %1458 = vmatpush3.bf16.msra.mxu1 %v1583_v17  ;;  %1470 = vmatpush3.bf16.msra.mxu0 %v1584_v18 }
 0x26c   : > { %1475 = vmatprep.subr.bf16.mxu1 %v1659_v1  ;;  %1487 = vmatprep.subr.bf16.mxu0 %v1659_v1 }
 0x26e   : > { %1460 = vmatmul.mubr.msk.bf16.vlgmr.msra.gmra.mrb[12].mxu1 %vm582_vm4, %v1851_v56  ;;  %1472 = vmatmul.mubr.msk.bf16.vlgmr.msra.gmra.mrb[12].mxu0 %vm582_vm4, %v1849_v55 }
 0x26f   : > { %1476 = vmatpush3.bf16.msra.mxu1 %v1585_v19  ;;  %1488 = vmatpush3.bf16.msra.mxu0 %v1586_v20 }
 0x270   : > { %1477 = vmatprep.subr.bf16.mxu1 %v1659_v1  ;;  %1489 = vmatprep.subr.bf16.mxu0 %v1659_v1 }
 0x271   : > { %1483 = vmatprep.mubr.msk.bf16.mxu1 %vm1660_vm0, %v1659_v1  ;;  %1495 = vmatprep.mubr.msk.bf16.mxu0 %vm1660_vm0, %v1659_v1 }
 0x273   : > { %1478 = vmatpush3.bf16.msra.mxu1 %v1587_v21  ;;  %1490 = vmatpush3.bf16.msra.mxu0 %v1588_v22 }
 0x274   : > { %1479 = vmatprep.subr.bf16.mxu1 %v1659_v1  ;;  %1491 = vmatprep.subr.bf16.mxu0 %v1659_v1 }
 0x277   : > { %1480 = vmatpush3.bf16.msra.mxu1 %v1589_v23  ;;  %1492 = vmatpush3.bf16.msra.mxu0 %v1590_v24 }
 0x278   : > { %1481 = vmatprep.subr.bf16.mxu1 %v1659_v1  ;;  %1493 = vmatprep.subr.bf16.mxu0 %v1659_v1 }
 0x27b   : > { %1482 = vmatpush3.bf16.msra.mxu1 %v1591_v25  ;;  %1494 = vmatpush3.bf16.msra.mxu0 %v1592_v26  ;;  %v1336_v26 = vld [vmem:[%s2047_s6] ss:$0 sm:$0xff] }
 0x27c   : > { %1499 = vmatprep.subr.bf16.mxu1 %v1659_v1 }
 0x27e   : > { %1484 = vmatmul.mubr.msk.bf16.vlgmr.msra.gmra.mrb[16].mxu1 %vm582_vm4, %v492_v12  ;;  %1496 = vmatmul.mubr.msk.bf16.vlgmr.msra.gmra.mrb[16].mxu0 %vm582_vm4, %v493_v11 }
 0x27f   : > { %1501 = vmatprep.mubr.msk.bf16.mxu1 %vm1660_vm0, %v1659_v1 }
 0x321   : > { %v620_v27 = vpop.f32.mrb[4].mxu1  ;;  %v687_v28 = vpop.f32.mrb[4].mxu0 }
 0x322   : > { %v1413_v29 = vpop.f32.mrb[5].mxu1  ;;  %v1425_v30 = vpop.f32.mrb[5].mxu0 }
 0x323   : > { %v623_v31 = vpop.f32.mrb[6].mxu1  ;;  %v690_v33 = vpop.f32.mrb[6].mxu0 }
 0x324   : > { %v1414_v34 = vpop.f32.mrb[7].mxu1  ;;  %v1426_v35 = vpop.f32.mrb[7].mxu0 }
 0x331   : > { %v754_v37 = vpop.f32.mrb[8].mxu1  ;;  %v821_v38 = vpop.f32.mrb[8].mxu0 }
 0x332   : > { %v1083_v39 = vcombine.low %v620_v27, %v754_v37  ;;  %v1091_v40 = vcombine.low %v687_v28, %v821_v38  ;;  %v1437_v41 = vpop.f32.mrb[9].mxu1  ;;  %v1449_v42 = vpop.f32.mrb[9].mxu0  ;;  %v1337_v28 = vld [vmem:[%s2048_s7] ss:$0 sm:$0xff] }
 0x333   : > { %v757_v43 = vpop.f32.mrb[10].mxu1  ;;  %v824_v44 = vpop.f32.mrb[10].mxu0 }
 0x334   : > { %v1090_v45 = vrot.slane %v1083_v39, %v1828_v32  ;;  %v1098_v1 = vrot.slane %v1091_v40, %v1828_v32  ;;  %v1438_v46 = vpop.f32.mrb[11].mxu1  ;;  %v1450_v47 = vpop.f32.mrb[11].mxu0 }
 0x336   : > { %v1115_v48 = vcombine.low %v1090_v45, %v1098_v1 }
 0x338   : > { %v1122_v8 = vrot.slane %v1115_v48, %v1831_v36 }
 0x341   : > { %v885_v49 = vpop.f32.mrb[12].mxu1  ;;  %v949_v50 = vpop.f32.mrb[12].mxu0 }
 0x342   : > { %v1461_v51 = vpop.f32.mrb[13].mxu1  ;;  %v1473_v52 = vpop.f32.mrb[13].mxu0 }
 0x343   : > { %v888_v53 = vpop.f32.mrb[14].mxu1  ;;  %v952_v54 = vpop.f32.mrb[14].mxu0 }
 0x344   : > { %v1462_v55 = vpop.f32.mrb[15].mxu1  ;;  %v1474_v56 = vpop.f32.mrb[15].mxu0 }
 0x351   : > { %v1013_v57 = vpop.f32.mrb[16].mxu1  ;;  %v1077_v58 = vpop.f32.mrb[16].mxu0 }
 0x352   : > { %v1099_v59 = vcombine.low %v885_v49, %v1013_v57  ;;  %v1107_v60 = vcombine.low %v949_v50, %v1077_v58  ;;  %v1485_v61 = vpop.f32.mrb[17].mxu1  ;;  %v1497_v62 = vpop.f32.mrb[17].mxu0 }
 0x353   : > { %v1016_v63 = vpop.f32.mrb[18].mxu1  ;;  %v1080_v0 = vpop.f32.mrb[18].mxu0 }
 0x354   : > { %v1106_v2 = vrot.slane %v1099_v59, %v1828_v32  ;;  %v1114_v4 = vrot.slane %v1107_v60, %v1828_v32  ;;  %v1486_v5 = vpop.f32.mrb[19].mxu1  ;;  %v1498_v6 = vpop.f32.mrb[19].mxu0 }
 0x356   : > { %v1123_v7 = vcombine.low %v1106_v2, %v1114_v4 }
 0x358   : > { %v1130_v9 = vrot.slane %v1123_v7, %v1831_v36 }
 0x35a   : > { %v1131_v10 = vcombine.low %v1122_v8, %v1130_v9 }
 0x35c   : > { %v1132_v11 = vpack.c.bf16 %v1131_v10, %v1131_v10 }
 0x35e   : > { %v1138_v12 = vsel %vm377_vm2, %v1132_v11, 0 }
 0x35f   : > { %1500 = vmatpush3.bf16.msra.mxu1 %v1138_v12 }
 0x362   : > { %1502 = vmatmul.mubr.msk.bf16.vlgmr.msra.gmra.mrb[20].mxu1 %vm373_vm3, %v1133_v13 }
 0x435   : > { %v1174_v14 = vpop.f32.mrb[20].mxu1 }
 0x436   : > { %v1175_v32 = vadd.f32 %v1174_v14, %v1777_v3  ;;  %v1503_v15 = vpop.f32.mrb[21].mxu1 }
 0x437   : > { %v1177_v16 = vpop.f32.mrb[22].mxu1 }
 0x438   : > { %v1180_v17 = vsel %vm327_vm1, %v1175_v32, 0.0  ;;  %v1504_v36 = vpop.f32.mrb[23].mxu1 }
 0x439   : > { %1181 = vadd.xlane.f32.xlu1 %v1180_v17 }
 0x4c6   : > { %v1182_v18 = vpop.xlane.xlu1 %1181 }
 0x4c7   : > { %v1184_v19 = vmul.f32 0.03125, %v1182_v18 }
 0x4c9   : > { %v1185_v20 = vsub.f32 %v1175_v32, %v1184_v19 }
 0x4cb   : > { %v1186_v21 = vmul.f32 %v1185_v20, %v1185_v20 }
 0x4cd   : > { %v1187_v22 = vsel %vm327_vm1, %v1186_v21, 0.0 }
 0x4ce   : > { %1188 = vadd.xlane.f32.xlu1 %v1187_v22 }
 0x55b   : > { %v1189_v23 = vpop.xlane.xlu1 %1188 }
 0x55c   : > { %v1190_v24 = vmul.f32 0.03125, %v1189_v23 }
 0x55e   : > { %v1191_v25 = vadd.f32 1e-05, %v1190_v24 }
 0x560   : > { %1593 = vrsqrt.f32 %v1191_v25 }
 0x56a   : > { %v1594_v3 = vpop.eup %1593 }
 0x56b   : > { %v1193_v27 = vmul.f32 %v1594_v3, %v1185_v20 }
 0x56d   : > { %v1201_v29 = vmul.f32 %v1336_v26, %v1193_v27 }
 0x56f   : > { %v1209_v30 = vadd.f32 %v1337_v28, %v1201_v29 }
 0x571   : > { %1210 = vst.msk [vmem:[%s296_s26] sm:$0xff] %vm327_vm1, %v1209_v30 }
 0x572   : > { %1608 = shalt.err (!%p1605_p3)
}
 0x573   : > { %s1609_s19 = scalar_lea.hbm %s1998_s17, 128  ;;  %s1613_s25 = scalar_lea.hbm %s2049_s8, 256 }
 0x574   : > { %p1610_p4 = scmp.ne.s32.totalorder %s1998_s17, %s1609_s19  ;;  %p1614_p9 = scmp.lt.u32.totalorder %s1998_s17, %s2049_s8 }
 0x575   : > { %p1615_p10 = scmp.lt.u32.totalorder %s1613_s25, %s1609_s19  ;;  %p1617_p12 = scmp.lt.u32.totalorder %s1609_s19, %s1998_s17 }
 0x576   : > { %p1611_p7 = pnand %p1610_p4, %p1748_p5 }
 0x577   : > { %p1616_p11 = por %p1615_p10, %p1614_p9 }
 0x578   : > { %p1612_p8 = pneg %p1611_p7 }
 0x579   : > { %p1618_p13 = por %p1617_p12, %p1616_p11 }
 0x57b   : > { %p1619_p0 = pnand %p1618_p13, %p1612_p8 }
 0x57d   : > { %1622 = shalt.err (!%p1619_p0)
}
 0x57e   : > { %1505 = dma.vmem_to_hbm [thread:$0]  (%p1748_p5), %s2000_s10, 128, %s1998_s17, %s1212_s18  }
 0x57f PF: > { %p1511_p1 = scmp.ge.s32.totalorder %s1657_s30, 2  ;;  %s1237_s13 = sand.u32 1, %s1645_s27  }
 0x580   : > { %s1238_s21 = scalar_lea.sflag [#allocation3], %s1237_s13 }
 0x581   : > { %p1508_p2 = pnand %p1511_p1, %p1752_p6 }
 0x583   : > { %1640 = dma.done.wait (!%p1508_p2), %s1238_s21, 128  }
 0x584   : > { %1642 = vsyncadd (!%p1508_p2), %s1238_s21, 4294967168  ;;  %p18_p3 = scmp.ge.s32.totalorder %s1735_s11, 4   ;;  %s2052_s27 = smov %s1649_s28 }
 0x585   : > { %s2053_s28 = smov %s1653_s29  ;;  %s2054_s29 = smov %s1746_s14 }
 0x586   : > { %s2055_s30 = smov %s1735_s11  ;;  %20 = sbr.rel (!%p18_p3) target bundleno = 3 (0x3), region = 87 }
 0x58d   :  { %1243 = vsyncpa [#allocation3], 1 }
 0x58e   :  { %1245 = vsyncpa [#allocation3 + $0x1], 1 }

// kernel: tpu_custom_call.1
= control target key start
LH: loop header
LB: loop body
LE: loop exit
PB: predicated region body
PF: predicated region fallthrough
CT: control target
= control target key end

     0   :  { %13 = vsyncpa [#allocation3], 0  ;;  %s2041_s0 = inlined_call_operand.vmem [shape: f32[2,8,32], index: 0, kind: input, shape index: {}]   ;;  %s2042_s1 = inlined_call_operand.vmem [shape: bf16[32,32], index: 1, kind: input, shape index: {}]   ;;  %s2043_s2 = inlined_call_operand.vmem [shape: f32[1,32], index: 2, kind: input, shape index: {}]   ;;  %s2044_s3 = inlined_call_operand.vmem [shape: bf16[1,8,8], index: 3, kind: input, shape index: {}]   ;;  %s2045_s4 = inlined_call_operand.vmem [shape: bf16[8,64,32], index: 4, kind: input, shape index: {}]   ;;  %s2046_s5 = inlined_call_operand.vmem [shape: bf16[1,8,8], index: 5, kind: input, shape index: {}]   ;;  %s2047_s6 = inlined_call_operand.vmem [shape: f32[1,32], index: 6, kind: input, shape index: {}]   ;;  %s2048_s7 = inlined_call_operand.vmem [shape: f32[1,32], index: 7, kind: input, shape index: {}]   ;;  %s2049_s8 = inlined_call_operand.hbm [shape: f32[2,8,32], index: 8, kind: output, shape index: {}]  }
   0x1   :  { %15 = vsyncpa [#allocation3 + $0x1], 0  ;;  %s1710_s27 = smov 0   ;;  %s1712_s28 = smov 0  }
   0x2   :  { %s1714_s29 = smov 0   ;;  %s1716_s30 = smov 0  }
   0x3 LB: > { %s1731_s9 = sadd.s32 4294967295, %s1657_s30   ;;  %s1284_s10 = sadd.s32 4294967294, %s1657_s30   ;;  %s1657_s30 = sphi %s1716_s30, %s2055_s30   ;;  %s1653_s29 = sphi %s1714_s29, %s2054_s29   ;;  %s1649_s28 = sphi %s1712_s28, %s2053_s28   ;;  %s1645_s27 = sphi %s1710_s27, %s2052_s27  }
   0x4   : > { %s1735_s11 = sadd.s32 1, %s1657_s30   ;;  %s201_s12 = sadd.s32 1, %s1653_s29 }
   0x5   : > { %s198_s13 = ssub.s32 %s1657_s30, %s1735_s11  ;;  %p211_p0 = scmp.ne.s32.totalorder %s1653_s29, %s1649_s28 }
   0x6   : > { %p199_p1 = scmp.eq.s32.totalorder %s198_s13, 0  ;;  %p212_p2 = scmp.eq.s32.totalorder %s1731_s9, 1 }
   0x7   : > { %p217_p3 = scmp.ne.s32.totalorder %s1649_s28, %s1645_s27  ;;  %p218_p4 = scmp.eq.s32.totalorder %s1284_s10, 1 }
   0x8   : > { %s1746_s14 = scalar_select %p199_p1, %s1653_s29, %s201_s12  }
   0x9   : > { %p1748_p5 = por %p212_p2, %p211_p0  ;;  %p1752_p6 = por %p218_p4, %p217_p3 }
   0xa   : > { %p1287_p7 = scmp.ge.s32.totalorder %s1657_s30, 1  ;;  %p264_p8 = scmp.lt.s32.totalorder %s1657_s30, 3 }
   0xc   : > { %p265_p9 = pnand %p1287_p7, %p264_p8 }
   0xd   : > { %v1559_v0 = vld [vmem:[%s2042_s1] sm:$0xff] (!%p265_p9)   ;;  %v1659_v1 = vmov (!%p265_p9), 0.0   ;;  %v1560_v2 = vld [vmem:[%s2042_s1 + $0x8] sm:$0xff] (!%p265_p9)   ;;  %vm1660_vm0 = vmmov (!%p265_p9), 0   ;;  %p297_p10 = scmp.lt.s32.totalorder (!%p265_p9), %s1731_s9, 1  ;;  %vm327_vm1 = vcmask (!%p265_p9), 261120   ;;  %v425_v22 = vlaneseq (!%p265_p9) }
   0xe   : > { %268 = sbr.rel (%p265_p9) target bundleno = 1407 (0x57f), region = 52  ;;  %1389 = vmatprep.subr.bf16.mxu0 (!%p265_p9), %v1659_v1  ;;  %1397 = vmatprep.subr.bf16.mxu1 (!%p265_p9), %v1659_v1  ;;  %v1290_v5 = vld [vmem:[%s2043_s2] ss:$0 sm:$0xff] (!%p265_p9)  ;;  %vm377_vm2 = vcmask (!%p265_p9), 1043456   ;;  %vm373_vm3 = vcmask (!%p265_p9), 64512   ;;  %v1563_v16 = vld [vmem:[%s2045_s4 + $0x8] sm:$0xff] (!%p265_p9)  }
   0xf   : > { %1390 = vmatpush3.bf16.msra.mxu0 (!%p265_p9), %v1559_v0  ;;  %1393 = vmatprep.mubr.msk.bf16.mxu0 (!%p265_p9), %vm1660_vm0, %v1659_v1  ;;  %v372_v13 = vld [vmem:[%s2044_s3] sm:$0xf] (!%p265_p9)  ;;  %v1564_v17 = vld [vmem:[%s2045_s4 + $0x28] sm:$0xff] (!%p265_p9)   ;;  %v1565_v18 = vld [vmem:[%s2045_s4 + $0x10] sm:$0xff] (!%p265_p9)   ;;  %v1661_v20 = vmov (!%p265_p9), 1983009808  }
  0x10   : > { %1391 = vmatprep.subr.bf16.mxu0 (!%p265_p9), %v1659_v1  ;;  %1399 = vmatprep.mubr.msk.bf16.mxu1 (!%p265_p9), %vm1660_vm0, %v1659_v1  ;;  %v1561_v14 = vld [vmem:[%s2045_s4] sm:$0xff] (!%p265_p9)   ;;  %v1566_v19 = vld [vmem:[%s2045_s4 + $0x30] sm:$0xff] (!%p265_p9)   ;;  %v423_v21 = vunpack.c.l.s4 (!%p265_p9), %v1661_v20  ;;  %v1662_v23 = vmov (!%p265_p9), 1934713408   ;;  %v426_v26 = vshrl.u32 (!%p265_p9), %v425_v22, 7  ;;  %v1567_v27 = vld [vmem:[%s2045_s4 + $0x18] sm:$0xff] (!%p265_p9)  }
  0x11   : > { %v1562_v15 = vld [vmem:[%s2045_s4 + $0x20] sm:$0xff] (!%p265_p9)   ;;  %v438_v24 = vunpack.c.l.s4 (!%p265_p9), %v1662_v23  ;;  %v1568_v28 = vld [vmem:[%s2045_s4 + $0x38] sm:$0xff] (!%p265_p9)   ;;  %s1663_s20 = smov (!%p265_p9), 32   ;;  %vm582_vm4 = vcmask (!%p265_p9), 523264   ;;  %v1571_v58 = vld [vmem:[%s2045_s4 + $0x48] sm:$0xff] (!%p265_p9)   ;;  %s294_s19 = sand.u32 (!%p265_p9), 1, %s1649_s28  }
  0x12   : > { %v424_v25 = vunpack.c.0.s8 (!%p265_p9), %v423_v21  ;;  %v1569_v53 = vld [vmem:[%s2045_s4 + $0x40] sm:$0xff] (!%p265_p9)   ;;  %v1572_v59 = vld [vmem:[%s2045_s4 + $0x68] sm:$0xff] (!%p265_p9)   ;;  %v1573_v62 = vld [vmem:[%s2045_s4 + $0x50] sm:$0xff] (!%p265_p9)   ;;  %s1212_s18 = scalar_lea.sflag (!%p265_p9), [#allocation3], %s294_s19 }
  0x13   : > { %1392 = vmatpush3.bf16.msra.mxu0 (!%p265_p9), %v1560_v2  ;;  %v439_v29 = vunpack.c.0.s8 (!%p265_p9), %v438_v24  ;;  %v1570_v54 = vld [vmem:[%s2045_s4 + $0x60] sm:$0xff] (!%p265_p9)   ;;  %v1574_v63 = vld [vmem:[%s2045_s4 + $0x70] sm:$0xff] (!%p265_p9)   ;;  %v1587_v21 = vld [vmem:[%s2045_s4 + $0xc8] sm:$0xff] (!%p265_p9)  }
  0x14   : > { %1415 = vmatprep.subr.bf16.mxu0 (!%p265_p9), %v1659_v1  ;;  %v1828_v32 = vsub.s32 (!%p265_p9), %v424_v25, %v426_v26  ;;  %v1586_v20 = vld [vmem:[%s2045_s4 + $0xe0] sm:$0xff] (!%p265_p9)   ;;  %v1588_v22 = vld [vmem:[%s2045_s4 + $0xe8] sm:$0xff] (!%p265_p9)   ;;  %v1589_v23 = vld [vmem:[%s2045_s4 + $0xd0] sm:$0xff] (!%p265_p9)  }
  0x15   : > { %s298_s21 = scalar_select %p297_p10, %s1731_s9, 1  ;;  %v1831_v36 = vsub.s32 %v439_v29, %v426_v26  ;;  %v1590_v24 = vld [vmem:[%s2045_s4 + $0xf0] sm:$0xff]   ;;  %v1591_v25 = vld [vmem:[%s2045_s4 + $0xd8] sm:$0xff]  }
  0x16   : > { %v1592_v26 = vld [vmem:[%s2045_s4 + $0xf8] sm:$0xff]  }
  0x17   : > { %s1289_s22 = sshll.u32 %s298_s21, 3 }
  0x18   : > { %s300_s25 = scalar_lea.vmem %s2041_s0, %s1289_s22 }
  0x19   : > { %v1777_v3 = vld [vmem:[%s300_s25] sm:$0xff]  ;;  %s1339_s25 = sshll.u32 %s1731_s9, 7  ;;  %s1664_s9 = smov [#allocation2]  }
  0x1a   : > { %v303_v4 = vpack.c.bf16 %v1777_v3, %v1777_v3  ;;  %s1998_s17 = scalar_lea.hbm %s2049_s8, %s1339_s25 }
  0x1c   : > { %1394 = vmatmul.mubr.msk.bf16.vlgmr.msra.gmra.mrb[0].mxu0 %vm327_vm1, %v303_v4 }
  0x1d   : > { %1423 = vmatprep.mubr.msk.bf16.mxu0 %vm1660_vm0, %v1659_v1  ;;  %1416 = vmatpush3.bf16.msra.mxu0 %v1562_v15  ;;  %v1581_v15 = vld [vmem:[%s2045_s4 + $0x90] sm:$0xff]  }
  0x1e   : > { %1417 = vmatprep.subr.bf16.mxu0 %v1659_v1 }
  0x21   : > { %1418 = vmatpush3.bf16.msra.mxu0 %v1564_v17  ;;  %v1583_v17 = vld [vmem:[%s2045_s4 + $0x98] sm:$0xff]  }
  0x22   : > { %1419 = vmatprep.subr.bf16.mxu0 %v1659_v1 }
  0x25   : > { %1420 = vmatpush3.bf16.msra.mxu0 %v1566_v19  ;;  %v1585_v19 = vld [vmem:[%s2045_s4 + $0xc0] sm:$0xff]  }
  0x26   : > { %1421 = vmatprep.subr.bf16.mxu0 %v1659_v1 }
  0x29   : > { %1422 = vmatpush3.bf16.msra.mxu0 %v1568_v28 }
  0x2a   : > { %1439 = vmatprep.subr.bf16.mxu0 %v1659_v1 }
  0xef   : > { %v365_v6 = vpop.f32.mrb[0].mxu0 }
  0xf0   : > { %v366_v7 = vadd.f32 %v1290_v5, %v365_v6  ;;  %v1395_v8 = vpop.f32.mrb[1].mxu0  ;;  %v1575_v5 = vld [vmem:[%s2045_s4 + $0x58] sm:$0xff]  }
  0xf1   : > { %v368_v9 = vpop.f32.mrb[2].mxu0  ;;  %v1576_v6 = vld [vmem:[%s2045_s4 + $0x78] sm:$0xff]  }
  0xf2   : > { %v371_v10 = vpack.c.bf16 %v366_v7, %v366_v7  ;;  %v1396_v11 = vpop.f32.mrb[3].mxu0  ;;  %v1577_v9 = vld [vmem:[%s2045_s4 + $0x80] sm:$0xff]  }
  0xf4   : > { %v379_v12 = vsel %vm377_vm2, %v371_v10, 0  ;;  %v1578_v10 = vld [vmem:[%s2045_s4 + $0xa0] sm:$0xff]  }
  0xf5   : > { %1398 = vmatpush3.bf16.msra.mxu1 %v379_v12 }
  0xf6   : > { %1403 = vmatprep.subr.bf16.mxu1 %v1659_v1 }
  0xf8   : > { %1400 = vmatmul.mubr.msk.bf16.vlgmr.msra.gmra.mrb[0].mxu1 %vm373_vm3, %v372_v13  ;;  %v1579_v13 = vld [vmem:[%s2045_s4 + $0x88] sm:$0xff]  }
  0xf9   : > { %1411 = vmatprep.mubr.msk.bf16.mxu1 %vm1660_vm0, %v1659_v1  ;;  %1404 = vmatpush3.bf16.msra.mxu1 %v1561_v14  ;;  %v1580_v14 = vld [vmem:[%s2045_s4 + $0xa8] sm:$0xff]  }
  0xfa   : > { %1405 = vmatprep.subr.bf16.mxu1 %v1659_v1 }
  0xfd   : > { %1406 = vmatpush3.bf16.msra.mxu1 %v1563_v16  ;;  %v1582_v16 = vld [vmem:[%s2045_s4 + $0xb0] sm:$0xff]  }
  0xfe   : > { %1407 = vmatprep.subr.bf16.mxu1 %v1659_v1 }
 0x101   : > { %1408 = vmatpush3.bf16.msra.mxu1 %v1565_v18  ;;  %v1584_v18 = vld [vmem:[%s2045_s4 + $0xb8] sm:$0xff]  }
 0x102   : > { %1409 = vmatprep.subr.bf16.mxu1 %v1659_v1 }
 0x105   : > { %1410 = vmatpush3.bf16.msra.mxu1 %v1567_v27 }
 0x106   : > { %1427 = vmatprep.subr.bf16.mxu1 %v1659_v1 }
 0x1cb   : > { %v415_v30 = vpop.f32.mrb[0].mxu1 }
 0x1cc   : > { %v421_v31 = vcombine.high %v415_v30, %v1659_v1  ;;  %v1401_v33 = vpop.f32.mrb[1].mxu1  ;;  %v428_v45 = vrot.slane %v415_v30, %v1828_v32 }
 0x1cd   : > { %v418_v34 = vpop.f32.mrb[2].mxu1 }
 0x1ce   : > { %v435_v35 = vrot.slane %v421_v31, %v1828_v32  ;;  %v1402_v37 = vpop.f32.mrb[3].mxu1  ;;  %v443_v46 = vrot.slane %v428_v45, %v1831_v36  ;;  %v436_v57 = vcombine.high %v428_v45, %v1659_v1 }
 0x1d0   : > { %v451_v38 = vcombine.high %v435_v35, %v1659_v1  ;;  %v458_v39 = vrot.slane %v435_v35, %v1831_v36  ;;  %v466_v48 = vcombine.high %v443_v46, %v1659_v1  ;;  %v450_v61 = vrot.slane %v436_v57, %v1831_v36 }
 0x1d2   : > { %v468_v40 = vcombine.high %v458_v39, %v1659_v1  ;;  %v465_v41 = vrot.slane %v451_v38, %v1831_v36  ;;  %v467_v4 = vcombine.high %v450_v61, %v1659_v1 }
 0x1d4   : > { %v1549_v42 = vpack.i.bf16 %v468_v40, %v458_v39  ;;  %v469_v43 = vcombine.high %v465_v41, %v1659_v1 }
 0x1d6   : > { %1550 = vrot.lane.b32.xlu0 %v1549_v42, %s1663_s20  ;;  %v1554_v44 = vpack.i.bf16 %v469_v43, %v465_v41 }
 0x1da   : > { %1555 = vrot.lane.b32.xlu0 %v1554_v44, %s1663_s20  ;;  %s1288_s20 = sshll.u32 %s294_s19, 3 }
 0x1db   : > { %s296_s26 = scalar_lea.vmem [#allocation2], %s1288_s20  ;;  %s1599_s20 = sshll.u32 %s1664_s9, 4  ;;  %s1600_s20 = int_to_ptr.vmem [resolvable:$false] %s1599_s20 }
 0x1dc   : > { %s1225_s10 = sshll.u32 %s296_s26, 4  ;;  %s1601_s22 = scalar_lea.vmem %s1600_s20, 256  ;;  %s2000_s10 = int_to_ptr.vmem [resolvable:$true] %s1225_s10 }
 0x1dd   : > { %s1595_s21 = scalar_lea.vmem %s2000_s10, 128  ;;  %p1602_p0 = scmp.lt.s32.totalorder %s2000_s10, %s1600_s20 }
 0x1de   : > { %p1596_p11 = scmp.ne.s32.totalorder %s2000_s10, %s1595_s21  ;;  %p1603_p1 = scmp.lt.s32.totalorder %s1601_s22, %s1595_s21 }
 0x1e0   : > { %p1597_p12 = pnand %p1596_p11, %p1748_p5  ;;  %p1604_p2 = por %p1603_p1, %p1602_p0 }
 0x1e2   : > { %p1598_p13 = pneg %p1597_p12 }
 0x1e4   : > { %p1605_p3 = pnand %p1604_p2, %p1598_p13 }
 0x248   : > { %v1551_v47 = vpop.permute.xlu0 %1550 }
 0x249   : > { %v1553_v49 = vunpack.i.h.bf16 %v1551_v47  ;;  %v1552_v50 = vunpack.i.l.bf16 %v1551_v47 }
 0x24b   : > { %v487_v51 = vsel %vm327_vm1, %v466_v48, %v1553_v49  ;;  %v486_v52 = vsel %vm327_vm1, %v443_v46, %v1552_v50 }
 0x24c   : > { %v1849_v55 = vpack.c.bf16 %v487_v51, %v487_v51  ;;  %v1851_v56 = vpack.c.bf16 %v486_v52, %v486_v52  ;;  %v1556_v60 = vpop.permute.xlu0 %1555 }
 0x24d   : > { %v1558_v0 = vunpack.i.h.bf16 %v1556_v60  ;;  %v1557_v2 = vunpack.i.l.bf16 %v1556_v60 }
 0x24e   : > { %1412 = vmatmul.mubr.msk.bf16.vlgmr.msra.gmra.mrb[4].mxu1 %vm582_vm4, %v1851_v56  ;;  %1424 = vmatmul.mubr.msk.bf16.vlgmr.msra.gmra.mrb[4].mxu0 %vm582_vm4, %v1849_v55 }
 0x24f   : > { %1428 = vmatpush3.bf16.msra.mxu1 %v1569_v53  ;;  %1440 = vmatpush3.bf16.msra.mxu0 %v1570_v54  ;;  %v489_v7 = vsel %vm327_vm1, %v467_v4, %v1558_v0  ;;  %v488_v8 = vsel %vm327_vm1, %v450_v61, %v1557_v2 }
 0x250   : > { %1429 = vmatprep.subr.bf16.mxu1 %v1659_v1  ;;  %1441 = vmatprep.subr.bf16.mxu0 %v1659_v1  ;;  %v493_v11 = vpack.c.bf16 %v489_v7, %v489_v7  ;;  %v492_v12 = vpack.c.bf16 %v488_v8, %v488_v8 }
 0x251   : > { %1435 = vmatprep.mubr.msk.bf16.mxu1 %vm1660_vm0, %v1659_v1  ;;  %1447 = vmatprep.mubr.msk.bf16.mxu0 %vm1660_vm0, %v1659_v1 }
 0x253   : > { %1430 = vmatpush3.bf16.msra.mxu1 %v1571_v58  ;;  %1442 = vmatpush3.bf16.msra.mxu0 %v1572_v59 }
 0x254   : > { %1431 = vmatprep.subr.bf16.mxu1 %v1659_v1  ;;  %1443 = vmatprep.subr.bf16.mxu0 %v1659_v1 }
 0x257   : > { %1432 = vmatpush3.bf16.msra.mxu1 %v1573_v62  ;;  %1444 = vmatpush3.bf16.msra.mxu0 %v1574_v63 }
 0x258   : > { %1433 = vmatprep.subr.bf16.mxu1 %v1659_v1  ;;  %1445 = vmatprep.subr.bf16.mxu0 %v1659_v1 }
 0x25b   : > { %1434 = vmatpush3.bf16.msra.mxu1 %v1575_v5  ;;  %1446 = vmatpush3.bf16.msra.mxu0 %v1576_v6 }
 0x25c   : > { %1451 = vmatprep.subr.bf16.mxu1 %v1659_v1  ;;  %1463 = vmatprep.subr.bf16.mxu0 %v1659_v1 }
 0x25e   : > { %1436 = vmatmul.mubr.msk.bf16.vlgmr.msra.gmra.mrb[8].mxu1 %vm582_vm4, %v492_v12  ;;  %1448 = vmatmul.mubr.msk.bf16.vlgmr.msra.gmra.mrb[8].mxu0 %vm582_vm4, %v493_v11 }
 0x25f   : > { %1452 = vmatpush3.bf16.msra.mxu1 %v1577_v9  ;;  %1464 = vmatpush3.bf16.msra.mxu0 %v1578_v10 }
 0x260   : > { %1453 = vmatprep.subr.bf16.mxu1 %v1659_v1  ;;  %1465 = vmatprep.subr.bf16.mxu0 %v1659_v1 }
 0x261   : > { %1459 = vmatprep.mubr.msk.bf16.mxu1 %vm1660_vm0, %v1659_v1  ;;  %1471 = vmatprep.mubr.msk.bf16.mxu0 %vm1660_vm0, %v1659_v1 }
 0x263   : > { %1454 = vmatpush3.bf16.msra.mxu1 %v1579_v13  ;;  %1466 = vmatpush3.bf16.msra.mxu0 %v1580_v14  ;;  %v1133_v13 = vld [vmem:[%s2046_s5] sm:$0xf] }
 0x264   : > { %1455 = vmatprep.subr.bf16.mxu1 %v1659_v1  ;;  %1467 = vmatprep.subr.bf16.mxu0 %v1659_v1 }
 0x267   : > { %1456 = vmatpush3.bf16.msra.mxu1 %v1581_v15  ;;  %1468 = vmatpush3.bf16.msra.mxu0 %v1582_v16 }
 0x268   : > { %1457 = vmatprep.subr.bf16.mxu1 %v1659_v1  ;;  %1469 = vmatprep.subr.bf16.mxu0 %v1659_v1 }
 0x26b   : > { %1458 = vmatpush3.bf16.msra.mxu1 %v1583_v17  ;;  %1470 = vmatpush3.bf16.msra.mxu0 %v1584_v18 }
 0x26c   : > { %1475 = vmatprep.subr.bf16.mxu1 %v1659_v1  ;;  %1487 = vmatprep.subr.bf16.mxu0 %v1659_v1 }
 0x26e   : > { %1460 = vmatmul.mubr.msk.bf16.vlgmr.msra.gmra.mrb[12].mxu1 %vm582_vm4, %v1851_v56  ;;  %1472 = vmatmul.mubr.msk.bf16.vlgmr.msra.gmra.mrb[12].mxu0 %vm582_vm4, %v1849_v55 }
 0x26f   : > { %1476 = vmatpush3.bf16.msra.mxu1 %v1585_v19  ;;  %1488 = vmatpush3.bf16.msra.mxu0 %v1586_v20 }
 0x270   : > { %1477 = vmatprep.subr.bf16.mxu1 %v1659_v1  ;;  %1489 = vmatprep.subr.bf16.mxu0 %v1659_v1 }
 0x271   : > { %1483 = vmatprep.mubr.msk.bf16.mxu1 %vm1660_vm0, %v1659_v1  ;;  %1495 = vmatprep.mubr.msk.bf16.mxu0 %vm1660_vm0, %v1659_v1 }
 0x273   : > { %1478 = vmatpush3.bf16.msra.mxu1 %v1587_v21  ;;  %1490 = vmatpush3.bf16.msra.mxu0 %v1588_v22 }
 0x274   : > { %1479 = vmatprep.subr.bf16.mxu1 %v1659_v1  ;;  %1491 = vmatprep.subr.bf16.mxu0 %v1659_v1 }
 0x277   : > { %1480 = vmatpush3.bf16.msra.mxu1 %v1589_v23  ;;  %1492 = vmatpush3.bf16.msra.mxu0 %v1590_v24 }
 0x278   : > { %1481 = vmatprep.subr.bf16.mxu1 %v1659_v1  ;;  %1493 = vmatprep.subr.bf16.mxu0 %v1659_v1 }
 0x27b   : > { %1482 = vmatpush3.bf16.msra.mxu1 %v1591_v25  ;;  %1494 = vmatpush3.bf16.msra.mxu0 %v1592_v26  ;;  %v1336_v26 = vld [vmem:[%s2047_s6] ss:$0 sm:$0xff] }
 0x27c   : > { %1499 = vmatprep.subr.bf16.mxu1 %v1659_v1 }
 0x27e   : > { %1484 = vmatmul.mubr.msk.bf16.vlgmr.msra.gmra.mrb[16].mxu1 %vm582_vm4, %v492_v12  ;;  %1496 = vmatmul.mubr.msk.bf16.vlgmr.msra.gmra.mrb[16].mxu0 %vm582_vm4, %v493_v11 }
 0x27f   : > { %1501 = vmatprep.mubr.msk.bf16.mxu1 %vm1660_vm0, %v1659_v1 }
 0x321   : > { %v620_v27 = vpop.f32.mrb[4].mxu1  ;;  %v687_v28 = vpop.f32.mrb[4].mxu0 }
 0x322   : > { %v1413_v29 = vpop.f32.mrb[5].mxu1  ;;  %v1425_v30 = vpop.f32.mrb[5].mxu0 }
 0x323   : > { %v623_v31 = vpop.f32.mrb[6].mxu1  ;;  %v690_v33 = vpop.f32.mrb[6].mxu0 }
 0x324   : > { %v1414_v34 = vpop.f32.mrb[7].mxu1  ;;  %v1426_v35 = vpop.f32.mrb[7].mxu0 }
 0x331   : > { %v754_v37 = vpop.f32.mrb[8].mxu1  ;;  %v821_v38 = vpop.f32.mrb[8].mxu0 }
 0x332   : > { %v1083_v39 = vcombine.low %v620_v27, %v754_v37  ;;  %v1091_v40 = vcombine.low %v687_v28, %v821_v38  ;;  %v1437_v41 = vpop.f32.mrb[9].mxu1  ;;  %v1449_v42 = vpop.f32.mrb[9].mxu0  ;;  %v1337_v28 = vld [vmem:[%s2048_s7] ss:$0 sm:$0xff] }
 0x333   : > { %v757_v43 = vpop.f32.mrb[10].mxu1  ;;  %v824_v44 = vpop.f32.mrb[10].mxu0 }
 0x334   : > { %v1090_v45 = vrot.slane %v1083_v39, %v1828_v32  ;;  %v1098_v1 = vrot.slane %v1091_v40, %v1828_v32  ;;  %v1438_v46 = vpop.f32.mrb[11].mxu1  ;;  %v1450_v47 = vpop.f32.mrb[11].mxu0 }
 0x336   : > { %v1115_v48 = vcombine.low %v1090_v45, %v1098_v1 }
 0x338   : > { %v1122_v8 = vrot.slane %v1115_v48, %v1831_v36 }
 0x341   : > { %v885_v49 = vpop.f32.mrb[12].mxu1  ;;  %v949_v50 = vpop.f32.mrb[12].mxu0 }
 0x342   : > { %v1461_v51 = vpop.f32.mrb[13].mxu1  ;;  %v1473_v52 = vpop.f32.mrb[13].mxu0 }
 0x343   : > { %v888_v53 = vpop.f32.mrb[14].mxu1  ;;  %v952_v54 = vpop.f32.mrb[14].mxu0 }
 0x344   : > { %v1462_v55 = vpop.f32.mrb[15].mxu1  ;;  %v1474_v56 = vpop.f32.mrb[15].mxu0 }
 0x351   : > { %v1013_v57 = vpop.f32.mrb[16].mxu1  ;;  %v1077_v58 = vpop.f32.mrb[16].mxu0 }
 0x352   : > { %v1099_v59 = vcombine.low %v885_v49, %v1013_v57  ;;  %v1107_v60 = vcombine.low %v949_v50, %v1077_v58  ;;  %v1485_v61 = vpop.f32.mrb[17].mxu1  ;;  %v1497_v62 = vpop.f32.mrb[17].mxu0 }
 0x353   : > { %v1016_v63 = vpop.f32.mrb[18].mxu1  ;;  %v1080_v0 = vpop.f32.mrb[18].mxu0 }
 0x354   : > { %v1106_v2 = vrot.slane %v1099_v59, %v1828_v32  ;;  %v1114_v4 = vrot.slane %v1107_v60, %v1828_v32  ;;  %v1486_v5 = vpop.f32.mrb[19].mxu1  ;;  %v1498_v6 = vpop.f32.mrb[19].mxu0 }
 0x356   : > { %v1123_v7 = vcombine.low %v1106_v2, %v1114_v4 }
 0x358   : > { %v1130_v9 = vrot.slane %v1123_v7, %v1831_v36 }
 0x35a   : > { %v1131_v10 = vcombine.low %v1122_v8, %v1130_v9 }
 0x35c   : > { %v1132_v11 = vpack.c.bf16 %v1131_v10, %v1131_v10 }
 0x35e   : > { %v1138_v12 = vsel %vm377_vm2, %v1132_v11, 0 }
 0x35f   : > { %1500 = vmatpush3.bf16.msra.mxu1 %v1138_v12 }
 0x362   : > { %1502 = vmatmul.mubr.msk.bf16.vlgmr.msra.gmra.mrb[20].mxu1 %vm373_vm3, %v1133_v13 }
 0x435   : > { %v1174_v14 = vpop.f32.mrb[20].mxu1 }
 0x436   : > { %v1175_v32 = vadd.f32 %v1174_v14, %v1777_v3  ;;  %v1503_v15 = vpop.f32.mrb[21].mxu1 }
 0x437   : > { %v1177_v16 = vpop.f32.mrb[22].mxu1 }
 0x438   : > { %v1180_v17 = vsel %vm327_vm1, %v1175_v32, 0.0  ;;  %v1504_v36 = vpop.f32.mrb[23].mxu1 }
 0x439   : > { %1181 = vadd.xlane.f32.xlu1 %v1180_v17 }
 0x4c6   : > { %v1182_v18 = vpop.xlane.xlu1 %1181 }
 0x4c7   : > { %v1184_v19 = vmul.f32 0.03125, %v1182_v18 }
 0x4c9   : > { %v1185_v20 = vsub.f32 %v1175_v32, %v1184_v19 }
 0x4cb   : > { %v1186_v21 = vmul.f32 %v1185_v20, %v1185_v20 }
 0x4cd   : > { %v1187_v22 = vsel %vm327_vm1, %v1186_v21, 0.0 }
 0x4ce   : > { %1188 = vadd.xlane.f32.xlu1 %v1187_v22 }
 0x55b   : > { %v1189_v23 = vpop.xlane.xlu1 %1188 }
 0x55c   : > { %v1190_v24 = vmul.f32 0.03125, %v1189_v23 }
 0x55e   : > { %v1191_v25 = vadd.f32 1e-05, %v1190_v24 }
 0x560   : > { %1593 = vrsqrt.f32 %v1191_v25 }
 0x56a   : > { %v1594_v3 = vpop.eup %1593 }
 0x56b   : > { %v1193_v27 = vmul.f32 %v1594_v3, %v1185_v20 }
 0x56d   : > { %v1201_v29 = vmul.f32 %v1336_v26, %v1193_v27 }
 0x56f   : > { %v1209_v30 = vadd.f32 %v1337_v28, %v1201_v29 }
 0x571   : > { %1210 = vst.msk [vmem:[%s296_s26] sm:$0xff] %vm327_vm1, %v1209_v30 }
 0x572   : > { %1608 = shalt.err (!%p1605_p3)
}
 0x573   : > { %s1609_s19 = scalar_lea.hbm %s1998_s17, 128  ;;  %s1613_s25 = scalar_lea.hbm %s2049_s8, 256 }
 0x574   : > { %p1610_p4 = scmp.ne.s32.totalorder %s1998_s17, %s1609_s19  ;;  %p1614_p9 = scmp.lt.u32.totalorder %s1998_s17, %s2049_s8 }
 0x575   : > { %p1615_p10 = scmp.lt.u32.totalorder %s1613_s25, %s1609_s19  ;;  %p1617_p12 = scmp.lt.u32.totalorder %s1609_s19, %s1998_s17 }
 0x576   : > { %p1611_p7 = pnand %p1610_p4, %p1748_p5 }
 0x577   : > { %p1616_p11 = por %p1615_p10, %p1614_p9 }
 0x578   : > { %p1612_p8 = pneg %p1611_p7 }
 0x579   : > { %p1618_p13 = por %p1617_p12, %p1616_p11 }
 0x57b   : > { %p1619_p0 = pnand %p1618_p13, %p1612_p8 }
 0x57d   : > { %1622 = shalt.err (!%p1619_p0)
}
 0x57e   : > { %1505 = dma.vmem_to_hbm [thread:$0]  (%p1748_p5), %s2000_s10, 128, %s1998_s17, %s1212_s18  }
 0x57f PF: > { %p1511_p1 = scmp.ge.s32.totalorder %s1657_s30, 2  ;;  %s1237_s13 = sand.u32 1, %s1645_s27  }
 0x580   : > { %s1238_s21 = scalar_lea.sflag [#allocation3], %s1237_s13 }
 0x581   : > { %p1508_p2 = pnand %p1511_p1, %p1752_p6 }
 0x583   : > { %1640 = dma.done.wait (!%p1508_p2), %s1238_s21, 128  }
 0x584   : > { %1642 = vsyncadd (!%p1508_p2), %s1238_s21, 4294967168  ;;  %p18_p3 = scmp.ge.s32.totalorder %s1735_s11, 4   ;;  %s2052_s27 = smov %s1649_s28 }
 0x585   : > { %s2053_s28 = smov %s1653_s29  ;;  %s2054_s29 = smov %s1746_s14 }
 0x586   : > { %s2055_s30 = smov %s1735_s11  ;;  %20 = sbr.rel (!%p18_p3) target bundleno = 3 (0x3), region = 87 }
 0x58d   :  { %1243 = vsyncpa [#allocation3], 1 }
 0x58e   :  { %1245 = vsyncpa [#allocation3 + $0x1], 1 }

</bundles_post_ra>
